<compile_context>
chip_gen: v5e
topology: v5e:2x2
jax: 0.10.0
libtpu: 0.0.40
codegen_flags: <defaults>
</compile_context>

<pallas_src>
import functools
import math

import jax
import jax.numpy as jnp
from jax.experimental import pallas as pl
from jax.experimental.pallas import tpu as pltpu


_SQRT_2_OVER_PI = math.sqrt(2.0 / math.pi)


def _gelu_tanh(x):
    # tanh-form GELU: jnp.tanh lowers to the EUP (its own VLIW slot); max
    # deviation from exact erf-GELU ~1e-3, inside the verification tolerance.
    return 0.5 * x * (1.0 + jnp.tanh(_SQRT_2_OVER_PI * (x + 0.044715 * (x * x * x))))


def _round_up(v, m):
    return (v + m - 1) // m * m


def _lsblock_kernel(x_ref, dwt_ref, bnb_ref, w2_ref, b2_ref, w3_ref, b3_ref,
                    o_ref, *, wp):
    """One (image, row-tile) step.

    x_ref : (C, Lin)  flattened, zero-padded (rows, W+2) plane chunk, f32
    o_ref : (C, P)    flattened output chunk (interior pixels at r*wp + j)
    dwt   : (C, 9)    depthwise taps (BN scale folded), k = kh*3 + kw
    bnb   : (C, 1)    BN bias (conv bias folded)
    w2,b2 : (C, C) bf16, (C, 1) f32     fc2 (1x1 conv)
    w3,b3 : (Cin, C) bf16, (Cin, 1) f32 fc3 (1x1 conv)
    """
    f32 = jnp.float32
    _, P = o_ref.shape

    # ---- fc1: depthwise 3x3 (cross-correlation, padding=1) + folded BN.
    # Output lane m corresponds to padded-plane position m + wp + 1, so tap
    # (kh, kw) is the lane slice starting at kh*wp + kw.  Only acc + one tap
    # are live; the lane shifts ride the XLU slot.
    acc = None
    resid = None
    for k in range(9):
        kh, kw = divmod(k, 3)
        s = kh * wp + kw
        tap = x_ref[:, s:s + P]                       # (C, P) f32
        if k == 4:                                    # center tap == residual input
            resid = tap
        contrib = tap * dwt_ref[:, k:k + 1]           # (C, P) * (C, 1)
        acc = contrib if acc is None else acc + contrib
    y = acc + bnb_ref[...]                            # BatchNorm (eval), bias folded

    # ---- fc2: 1x1 conv == (C, C) @ (C, P) on the MXU (bf16 operands, f32 acc).
    yb = y.astype(jnp.bfloat16)
    h = jnp.dot(w2_ref[...], yb, preferred_element_type=f32) + b2_ref[...]
    h = _gelu_tanh(h)

    # ---- fc3: back to in_features.
    h = jnp.dot(w3_ref[...], h.astype(jnp.bfloat16),
                preferred_element_type=f32) + b3_ref[...]

    # ---- residual add (Dropout(p=0) == identity), lane-dense store.
    o_ref[...] = (resid + h).astype(o_ref.dtype)


def _pick_row_tile(H, wp, C, target_bytes=2 << 20):
    """Bytes-driven tile picker: largest divisor of H whose input chunk is
    within ~target_bytes; whole image if it already fits."""
    def tile_bytes(th):
        p = _round_up(th * wp, 128)
        lin = _round_up(2 * wp + 2 + p, 128)
        return 4 * C * lin

    if tile_bytes(H) <= target_bytes:
        return H
    best = 1
    for th in range(1, H):
        if H % th == 0 and tile_bytes(th) <= target_bytes:
            best = th
    return best


def lsblock_forward(x_nchw, kp, row_tile=None):
    """x_nchw: (N, C_in, H, W) float32, PyTorch layout. Returns same layout."""
    N, Cin, H, W = x_nchw.shape
    C = kp["w2"].shape[0]  # hidden_features
    assert Cin == C, "kernel implements the depthwise case (in_features == hidden_features)"
    # TODO(synk): general grouped fc1 (in_features = k*hidden_features, k>1) not implemented.

    wp = W + 2
    TH = _pick_row_tile(H, wp, C) if row_tile is None else row_tile
    assert H % TH == 0
    n_tiles = H // TH
    P = _round_up(TH * wp, 128)                 # output lanes per tile (128-multiple)
    Lin = _round_up(2 * wp + 2 + P, 128)        # input lanes per tile (covers all taps)

    # Input glue: NCHW is already channel-major -> no transpose.  Zero-pad the
    # spatial plane, flatten (H+2, W+2) onto the lane axis, and (if tiled)
    # build overlapping per-tile lane chunks so no in-kernel halo handling is
    # needed.
    xpad = jnp.pad(x_nchw, ((0, 0), (0, 0), (1, 1), (1, 1)))          # (N, C, H+2, W+2)
    xflat = xpad.reshape(N, C, (H + 2) * wp)
    need = (n_tiles - 1) * TH * wp + Lin
    if need > xflat.shape[-1]:
        xflat = jnp.pad(xflat, ((0, 0), (0, 0), (0, need - xflat.shape[-1])))
    if n_tiles == 1:
        xov = xflat[:, :, :Lin]                                       # (N, C, Lin)
    else:
        idx = (jnp.arange(n_tiles)[:, None] * (TH * wp)
               + jnp.arange(Lin)[None, :]).reshape(-1)
        xov = jnp.take(xflat, idx, axis=2)                            # (N, C, n_tiles*Lin)

    kernel = functools.partial(_lsblock_kernel, wp=wp)

    # Explicit VMEM budget (double-buffered in/out + constants), clamped so it
    # is valid on v5e (16 MiB scoped default) and v7x (64 MiB physical).
    in_bytes = 4 * C * Lin
    out_bytes = 4 * C * P
    const_bytes = 4 * C * 9 + 4 * C + 2 * C * C + 4 * C + 2 * C * Cin + 4 * Cin
    est = 2 * (in_bytes + out_bytes) + 2 * const_bytes
    vmem_limit = int(min(max(32 << 20, 2 * est), 48 << 20))

    def const_spec(shape):
        return pl.BlockSpec(shape, lambda n, i: (0,) * len(shape))

    out = pl.pallas_call(
        kernel,
        out_shape=jax.ShapeDtypeStruct((N, C, n_tiles * P), x_nchw.dtype),
        grid=(N, n_tiles),
        in_specs=[
            pl.BlockSpec((None, C, Lin), lambda n, i: (n, 0, i)),     # input chunk
            const_spec((C, 9)),                                       # depthwise taps (BN-scaled)
            const_spec((C, 1)),                                       # BN bias (+ conv bias)
            const_spec((C, C)),                                       # fc2 weight (bf16)
            const_spec((C, 1)),                                       # fc2 bias
            const_spec((Cin, C)),                                     # fc3 weight (bf16)
            const_spec((Cin, 1)),                                     # fc3 bias
        ],
        out_specs=pl.BlockSpec((None, C, P), lambda n, i: (n, 0, i)),
        compiler_params=pltpu.CompilerParams(
            dimension_semantics=("parallel", "parallel"),
            vmem_limit_bytes=vmem_limit),
    )(xov, kp["dwt"], kp["bnb"], kp["w2"], kp["b2"], kp["w3"], kp["b3"])

    # Output glue: drop the pad/garbage lanes and reshape back to NCHW
    # (no transpose needed - the kernel already produced channel-major data).
    out = out.reshape(N, C, n_tiles, P)[..., :TH * wp]
    out = out.reshape(N, C, n_tiles, TH, wp)[..., :W]
    return out.reshape(N, C, H, W)


def init_params(key, in_features, hidden_features, eps=1e-5):
    """Deterministic synthetic parameters in PyTorch shapes + kernel-ready form."""
    assert in_features == hidden_features
    C = hidden_features
    ks = jax.random.split(key, 10)
    fc1_w = 0.2 * jax.random.normal(ks[0], (C, 1, 3, 3), jnp.float32)   # (O, I/g, kH, kW)
    fc1_b = 0.1 * jax.random.normal(ks[1], (C,), jnp.float32)
    gamma = 1.0 + 0.1 * jax.random.normal(ks[2], (C,), jnp.float32)
    beta = 0.1 * jax.random.normal(ks[3], (C,), jnp.float32)
    rmean = 0.1 * jax.random.normal(ks[4], (C,), jnp.float32)
    rvar = 0.5 + jnp.abs(jax.random.normal(ks[5], (C,), jnp.float32))
    fc2_w = (1.0 / math.sqrt(C)) * jax.random.normal(ks[6], (C, C, 1, 1), jnp.float32)
    fc2_b = 0.1 * jax.random.normal(ks[7], (C,), jnp.float32)
    fc3_w = (1.0 / math.sqrt(C)) * jax.random.normal(ks[8], (in_features, C, 1, 1), jnp.float32)
    fc3_b = 0.1 * jax.random.normal(ks[9], (in_features,), jnp.float32)

    torch_params = dict(fc1_w=fc1_w, fc1_b=fc1_b, gamma=gamma, beta=beta,
                        rmean=rmean, rvar=rvar, eps=eps,
                        fc2_w=fc2_w, fc2_b=fc2_b, fc3_w=fc3_w, fc3_b=fc3_b)

    bn_scale = gamma / jnp.sqrt(rvar + eps)
    kernel_params = dict(
        # depthwise taps with BN scale folded in: (C, 9), k = kh*3 + kw
        dwt=fc1_w[:, 0].reshape(C, 9) * bn_scale[:, None],
        # BN(conv + b1) = bn_s*conv + (beta + (b1 - rmean)*bn_s): bias folded here
        bnb=(beta + (fc1_b - rmean) * bn_scale).reshape(C, 1),
        w2=fc2_w[:, :, 0, 0].astype(jnp.bfloat16),        # (out, in) - used as dot LHS
        b2=fc2_b.reshape(C, 1),
        w3=fc3_w[:, :, 0, 0].astype(jnp.bfloat16),        # (in_features, hidden)
        b3=fc3_b.reshape(in_features, 1),
    )
    return torch_params, kernel_params


def lsblock_reference(x, tp):
    """Pure-JAX NCHW mirror of the PyTorch forward (eval mode), for verification."""
    C = tp["fc1_w"].shape[0]
    y = jax.lax.conv_general_dilated(
        x, tp["fc1_w"], window_strides=(1, 1), padding=((1, 1), (1, 1)),
        feature_group_count=C, dimension_numbers=("NCHW", "OIHW", "NCHW"))
    y = y + tp["fc1_b"][None, :, None, None]
    y = (y - tp["rmean"][None, :, None, None]) / jnp.sqrt(tp["rvar"] + tp["eps"])[None, :, None, None]
    y = y * tp["gamma"][None, :, None, None] + tp["beta"][None, :, None, None]
    y = jnp.einsum("nchw,oc->nohw", y, tp["fc2_w"][:, :, 0, 0],
                   precision=jax.lax.Precision.HIGHEST) + tp["fc2_b"][None, :, None, None]
    y = jax.nn.gelu(y, approximate=False)
    y = jnp.einsum("nchw,oc->nohw", y, tp["fc3_w"][:, :, 0, 0],
                   precision=jax.lax.Precision.HIGHEST) + tp["fc3_b"][None, :, None, None]
    return x + y


if __name__ == "__main__":
    key = jax.random.PRNGKey(0)
    kx, kparam = jax.random.split(key)

    # Small shapes consistent with the module: in_features == hidden_features == 32.
    N, C, H, W = 2, 32, 16, 16
    x = jax.random.normal(kx, (N, C, H, W), jnp.float32)
    torch_params, kernel_params = init_params(kparam, C, C)

    out = jax.block_until_ready(jax.jit(lsblock_forward)(x, kernel_params))
    ref = jax.block_until_ready(lsblock_reference(x, torch_params))

    assert out.shape == x.shape and out.dtype == x.dtype
    max_err = float(jnp.max(jnp.abs(out - ref)))
    # bf16 MXU matmuls + tanh-GELU vs. the f32 / exact-erf reference give
    # |err| ~1e-2 worst case at C=32; real indexing/weight bugs are >>1e-1.
    if not jnp.allclose(out, ref, atol=3e-2, rtol=3e-2):
        raise AssertionError(f"kernel/reference mismatch, max abs err = {max_err}")

    print("KERNEL_OK")
</pallas_src>

<mosaic_0001>
module attributes {stable_mosaic.version = 11 : i64} {
  func.func @_lsblock_kernel(%arg0: i32, %arg1: i32, %arg2: memref<1x32x512xf32, #tpu.memory_space<vmem>>, %arg3: memref<32x9xf32, #tpu.memory_space<vmem>>, %arg4: memref<32x1xf32, #tpu.memory_space<vmem>>, %arg5: memref<32x32xbf16, #tpu.memory_space<vmem>>, %arg6: memref<32x1xf32, #tpu.memory_space<vmem>>, %arg7: memref<32x32xbf16, #tpu.memory_space<vmem>>, %arg8: memref<32x1xf32, #tpu.memory_space<vmem>>, %arg9: memref<1x32x384xf32, #tpu.memory_space<vmem>>) attributes {dimension_semantics = [#tpu.dimension_semantics<parallel>, #tpu.dimension_semantics<parallel>], iteration_bounds = array<i64: 2, 1>, scalar_prefetch = 0 : i64, scratch_operands = 0 : i64, tpu.core_type = #tpu.core_type<tc>, window_params = [{transform_indices = @transform_0, window_bounds = array<i64: 1, 32, 512>}, {pipeline_mode = #tpu.pipeline_mode<synchronous>, transform_indices = @transform_1, window_bounds = array<i64: 32, 9>}, {pipeline_mode = #tpu.pipeline_mode<synchronous>, transform_indices = @transform_2, window_bounds = array<i64: 32, 1>}, {pipeline_mode = #tpu.pipeline_mode<synchronous>, transform_indices = @transform_3, window_bounds = array<i64: 32, 32>}, {pipeline_mode = #tpu.pipeline_mode<synchronous>, transform_indices = @transform_4, window_bounds = array<i64: 32, 1>}, {pipeline_mode = #tpu.pipeline_mode<synchronous>, transform_indices = @transform_5, window_bounds = array<i64: 32, 32>}, {pipeline_mode = #tpu.pipeline_mode<synchronous>, transform_indices = @transform_6, window_bounds = array<i64: 32, 1>}, {transform_indices = @transform_7, window_bounds = array<i64: 1, 32, 384>}]} {
    %c0 = arith.constant 0 : index
    %c0_0 = arith.constant 0 : index
    %c0_1 = arith.constant 0 : index
    %0 = vector.load %arg2[%c0, %c0_0, %c0_1] : memref<1x32x512xf32, #tpu.memory_space<vmem>>, vector<1x32x384xf32>
    %1 = vector.shape_cast %0 : vector<1x32x384xf32> to vector<32x384xf32>
    %c0_2 = arith.constant 0 : index
    %c0_3 = arith.constant 0 : index
    %2 = vector.load %arg3[%c0_2, %c0_3] : memref<32x9xf32, #tpu.memory_space<vmem>>, vector<32x1xf32>
    %3 = vector.broadcast %2 : vector<32x1xf32> to vector<32x384xf32>
    %4 = arith.mulf %1, %3 : vector<32x384xf32>
    %c0_4 = arith.constant 0 : index
    %c0_5 = arith.constant 0 : index
    %c1 = arith.constant 1 : index
    %5 = vector.load %arg2[%c0_4, %c0_5, %c1] : memref<1x32x512xf32, #tpu.memory_space<vmem>>, vector<1x32x384xf32>
    %6 = vector.shape_cast %5 : vector<1x32x384xf32> to vector<32x384xf32>
    %c0_6 = arith.constant 0 : index
    %c1_7 = arith.constant 1 : index
    %7 = vector.load %arg3[%c0_6, %c1_7] : memref<32x9xf32, #tpu.memory_space<vmem>>, vector<32x1xf32>
    %8 = vector.broadcast %7 : vector<32x1xf32> to vector<32x384xf32>
    %9 = arith.mulf %6, %8 : vector<32x384xf32>
    %10 = arith.addf %4, %9 : vector<32x384xf32>
    %c0_8 = arith.constant 0 : index
    %c0_9 = arith.constant 0 : index
    %c2 = arith.constant 2 : index
    %11 = vector.load %arg2[%c0_8, %c0_9, %c2] : memref<1x32x512xf32, #tpu.memory_space<vmem>>, vector<1x32x384xf32>
    %12 = vector.shape_cast %11 : vector<1x32x384xf32> to vector<32x384xf32>
    %c0_10 = arith.constant 0 : index
    %c2_11 = arith.constant 2 : index
    %13 = vector.load %arg3[%c0_10, %c2_11] : memref<32x9xf32, #tpu.memory_space<vmem>>, vector<32x1xf32>
    %14 = vector.broadcast %13 : vector<32x1xf32> to vector<32x384xf32>
    %15 = arith.mulf %12, %14 : vector<32x384xf32>
    %16 = arith.addf %10, %15 : vector<32x384xf32>
    %c0_12 = arith.constant 0 : index
    %c0_13 = arith.constant 0 : index
    %c18 = arith.constant 18 : index
    %17 = vector.load %arg2[%c0_12, %c0_13, %c18] : memref<1x32x512xf32, #tpu.memory_space<vmem>>, vector<1x32x384xf32>
    %18 = vector.shape_cast %17 : vector<1x32x384xf32> to vector<32x384xf32>
    %c0_14 = arith.constant 0 : index
    %c3 = arith.constant 3 : index
    %19 = vector.load %arg3[%c0_14, %c3] : memref<32x9xf32, #tpu.memory_space<vmem>>, vector<32x1xf32>
    %20 = vector.broadcast %19 : vector<32x1xf32> to vector<32x384xf32>
    %21 = arith.mulf %18, %20 : vector<32x384xf32>
    %22 = arith.addf %16, %21 : vector<32x384xf32>
    %c0_15 = arith.constant 0 : index
    %c0_16 = arith.constant 0 : index
    %c19 = arith.constant 19 : index
    %23 = vector.load %arg2[%c0_15, %c0_16, %c19] : memref<1x32x512xf32, #tpu.memory_space<vmem>>, vector<1x32x384xf32>
    %24 = vector.shape_cast %23 : vector<1x32x384xf32> to vector<32x384xf32>
    %c0_17 = arith.constant 0 : index
    %c4 = arith.constant 4 : index
    %25 = vector.load %arg3[%c0_17, %c4] : memref<32x9xf32, #tpu.memory_space<vmem>>, vector<32x1xf32>
    %26 = vector.broadcast %25 : vector<32x1xf32> to vector<32x384xf32>
    %27 = arith.mulf %24, %26 : vector<32x384xf32>
    %28 = arith.addf %22, %27 : vector<32x384xf32>
    %c0_18 = arith.constant 0 : index
    %c0_19 = arith.constant 0 : index
    %c20 = arith.constant 20 : index
    %29 = vector.load %arg2[%c0_18, %c0_19, %c20] : memref<1x32x512xf32, #tpu.memory_space<vmem>>, vector<1x32x384xf32>
    %30 = vector.shape_cast %29 : vector<1x32x384xf32> to vector<32x384xf32>
    %c0_20 = arith.constant 0 : index
    %c5 = arith.constant 5 : index
    %31 = vector.load %arg3[%c0_20, %c5] : memref<32x9xf32, #tpu.memory_space<vmem>>, vector<32x1xf32>
    %32 = vector.broadcast %31 : vector<32x1xf32> to vector<32x384xf32>
    %33 = arith.mulf %30, %32 : vector<32x384xf32>
    %34 = arith.addf %28, %33 : vector<32x384xf32>
    %c0_21 = arith.constant 0 : index
    %c0_22 = arith.constant 0 : index
    %c36 = arith.constant 36 : index
    %35 = vector.load %arg2[%c0_21, %c0_22, %c36] : memref<1x32x512xf32, #tpu.memory_space<vmem>>, vector<1x32x384xf32>
    %36 = vector.shape_cast %35 : vector<1x32x384xf32> to vector<32x384xf32>
    %c0_23 = arith.constant 0 : index
    %c6 = arith.constant 6 : index
    %37 = vector.load %arg3[%c0_23, %c6] : memref<32x9xf32, #tpu.memory_space<vmem>>, vector<32x1xf32>
    %38 = vector.broadcast %37 : vector<32x1xf32> to vector<32x384xf32>
    %39 = arith.mulf %36, %38 : vector<32x384xf32>
    %40 = arith.addf %34, %39 : vector<32x384xf32>
    %c0_24 = arith.constant 0 : index
    %c0_25 = arith.constant 0 : index
    %c37 = arith.constant 37 : index
    %41 = vector.load %arg2[%c0_24, %c0_25, %c37] : memref<1x32x512xf32, #tpu.memory_space<vmem>>, vector<1x32x384xf32>
    %42 = vector.shape_cast %41 : vector<1x32x384xf32> to vector<32x384xf32>
    %c0_26 = arith.constant 0 : index
    %c7 = arith.constant 7 : index
    %43 = vector.load %arg3[%c0_26, %c7] : memref<32x9xf32, #tpu.memory_space<vmem>>, vector<32x1xf32>
    %44 = vector.broadcast %43 : vector<32x1xf32> to vector<32x384xf32>
    %45 = arith.mulf %42, %44 : vector<32x384xf32>
    %46 = arith.addf %40, %45 : vector<32x384xf32>
    %c0_27 = arith.constant 0 : index
    %c0_28 = arith.constant 0 : index
    %c38 = arith.constant 38 : index
    %47 = vector.load %arg2[%c0_27, %c0_28, %c38] : memref<1x32x512xf32, #tpu.memory_space<vmem>>, vector<1x32x384xf32>
    %48 = vector.shape_cast %47 : vector<1x32x384xf32> to vector<32x384xf32>
    %c0_29 = arith.constant 0 : index
    %c8 = arith.constant 8 : index
    %49 = vector.load %arg3[%c0_29, %c8] : memref<32x9xf32, #tpu.memory_space<vmem>>, vector<32x1xf32>
    %50 = vector.broadcast %49 : vector<32x1xf32> to vector<32x384xf32>
    %51 = arith.mulf %48, %50 : vector<32x384xf32>
    %52 = arith.addf %46, %51 : vector<32x384xf32>
    %c0_30 = arith.constant 0 : index
    %c0_31 = arith.constant 0 : index
    %53 = vector.load %arg4[%c0_30, %c0_31] : memref<32x1xf32, #tpu.memory_space<vmem>>, vector<32x1xf32>
    %54 = vector.broadcast %53 : vector<32x1xf32> to vector<32x384xf32>
    %55 = arith.addf %52, %54 : vector<32x384xf32>
    %56 = arith.truncf %55 : vector<32x384xf32> to vector<32x384xbf16>
    %c0_32 = arith.constant 0 : index
    %c0_33 = arith.constant 0 : index
    %57 = vector.load %arg5[%c0_32, %c0_33] : memref<32x32xbf16, #tpu.memory_space<vmem>>, vector<32x32xbf16>
    %cst = arith.constant dense<0.000000e+00> : vector<32x384xf32>
    %58 = tpu.matmul %57, %56, %cst {dimension_numbers = #tpu.dot_dimension_numbers<[1], [0], [0], [1], [0, 0, 1, 1], [], []>} : vector<32x32xbf16>, vector<32x384xbf16>, vector<32x384xf32> -> vector<32x384xf32>
    %c0_34 = arith.constant 0 : index
    %c0_35 = arith.constant 0 : index
    %59 = vector.load %arg6[%c0_34, %c0_35] : memref<32x1xf32, #tpu.memory_space<vmem>>, vector<32x1xf32>
    %60 = vector.broadcast %59 : vector<32x1xf32> to vector<32x384xf32>
    %61 = arith.addf %58, %60 : vector<32x384xf32>
    %cst_36 = arith.constant 5.000000e-01 : f32
    %62 = vector.broadcast %cst_36 : f32 to vector<32x384xf32>
    %63 = arith.mulf %62, %61 : vector<32x384xf32>
    %64 = arith.mulf %61, %61 : vector<32x384xf32>
    %65 = arith.mulf %64, %61 : vector<32x384xf32>
    %cst_37 = arith.constant 4.471500e-02 : f32
    %66 = vector.broadcast %cst_37 : f32 to vector<32x384xf32>
    %67 = arith.mulf %66, %65 : vector<32x384xf32>
    %68 = arith.addf %61, %67 : vector<32x384xf32>
    %cst_38 = arith.constant 0.797884583 : f32
    %69 = vector.broadcast %cst_38 : f32 to vector<32x384xf32>
    %70 = arith.mulf %69, %68 : vector<32x384xf32>
    %71 = math.tanh %70 : vector<32x384xf32>
    %cst_39 = arith.constant 1.000000e+00 : f32
    %72 = vector.broadcast %cst_39 : f32 to vector<32x384xf32>
    %73 = arith.addf %72, %71 : vector<32x384xf32>
    %74 = arith.mulf %63, %73 : vector<32x384xf32>
    %c0_40 = arith.constant 0 : index
    %c0_41 = arith.constant 0 : index
    %75 = vector.load %arg7[%c0_40, %c0_41] : memref<32x32xbf16, #tpu.memory_space<vmem>>, vector<32x32xbf16>
    %76 = arith.truncf %74 : vector<32x384xf32> to vector<32x384xbf16>
    %cst_42 = arith.constant dense<0.000000e+00> : vector<32x384xf32>
    %77 = tpu.matmul %75, %76, %cst_42 {dimension_numbers = #tpu.dot_dimension_numbers<[1], [0], [0], [1], [0, 0, 1, 1], [], []>} : vector<32x32xbf16>, vector<32x384xbf16>, vector<32x384xf32> -> vector<32x384xf32>
    %c0_43 = arith.constant 0 : index
    %c0_44 = arith.constant 0 : index
    %78 = vector.load %arg8[%c0_43, %c0_44] : memref<32x1xf32, #tpu.memory_space<vmem>>, vector<32x1xf32>
    %79 = vector.broadcast %78 : vector<32x1xf32> to vector<32x384xf32>
    %80 = arith.addf %77, %79 : vector<32x384xf32>
    %81 = arith.addf %24, %80 : vector<32x384xf32>
    %c0_45 = arith.constant 0 : index
    %c0_46 = arith.constant 0 : index
    %c0_47 = arith.constant 0 : index
    %82 = vector.load %arg9[%c0_45, %c0_46, %c0_47] : memref<1x32x384xf32, #tpu.memory_space<vmem>>, vector<1x32x384xf32>
    %83 = vector.shape_cast %82 : vector<1x32x384xf32> to vector<32x384xf32>
    %84 = vector.shape_cast %81 : vector<32x384xf32> to vector<1x32x384xf32>
    tpu.vector_store %arg9[%c0_45, %c0_46, %c0_47], %84 {strides = array<i32>} : memref<1x32x384xf32, #tpu.memory_space<vmem>>, vector<1x32x384xf32>,
    return
  }
  func.func @transform_0(%arg0: i32, %arg1: i32) -> (i32, i32, i32) {
    %c0_i32 = arith.constant 0 : i32
    %c0_i32_0 = arith.constant 0 : i32
    return %arg0, %c0_i32, %arg1 : i32, i32, i32
  }
  func.func @transform_1(%arg0: i32, %arg1: i32) -> (i32, i32) {
    %c0_i32 = arith.constant 0 : i32
    %c0_i32_0 = arith.constant 0 : i32
    %c0_i32_1 = arith.constant 0 : i32
    return %c0_i32, %c0_i32_0 : i32, i32
  }
  func.func @transform_2(%arg0: i32, %arg1: i32) -> (i32, i32) {
    %c0_i32 = arith.constant 0 : i32
    %c0_i32_0 = arith.constant 0 : i32
    %c0_i32_1 = arith.constant 0 : i32
    return %c0_i32, %c0_i32_0 : i32, i32
  }
  func.func @transform_3(%arg0: i32, %arg1: i32) -> (i32, i32) {
    %c0_i32 = arith.constant 0 : i32
    %c0_i32_0 = arith.constant 0 : i32
    %c0_i32_1 = arith.constant 0 : i32
    return %c0_i32, %c0_i32_0 : i32, i32
  }
  func.func @transform_4(%arg0: i32, %arg1: i32) -> (i32, i32) {
    %c0_i32 = arith.constant 0 : i32
    %c0_i32_0 = arith.constant 0 : i32
    %c0_i32_1 = arith.constant 0 : i32
    return %c0_i32, %c0_i32_0 : i32, i32
  }
  func.func @transform_5(%arg0: i32, %arg1: i32) -> (i32, i32) {
    %c0_i32 = arith.constant 0 : i32
    %c0_i32_0 = arith.constant 0 : i32
    %c0_i32_1 = arith.constant 0 : i32
    return %c0_i32, %c0_i32_0 : i32, i32
  }
  func.func @transform_6(%arg0: i32, %arg1: i32) -> (i32, i32) {
    %c0_i32 = arith.constant 0 : i32
    %c0_i32_0 = arith.constant 0 : i32
    %c0_i32_1 = arith.constant 0 : i32
    return %c0_i32, %c0_i32_0 : i32, i32
  }
  func.func @transform_7(%arg0: i32, %arg1: i32) -> (i32, i32, i32) {
    %c0_i32 = arith.constant 0 : i32
    %c0_i32_0 = arith.constant 0 : i32
    return %arg0, %c0_i32, %arg1 : i32, i32, i32
  }
}

</mosaic_0001>

<bundles_post_ra>
// kernel: lsblock_forward.1
= control target key start
LH: loop header
LB: loop body
LE: loop exit
PB: predicated region body
PF: predicated region fallthrough
CT: control target
= control target key end

     0   :  { %s2169_s24 = smov 0   ;;  %s2171_s25 = smov 0   ;;  %s3371_s0 = inlined_call_operand.vmem [shape: f32[2,32,512], index: 0, kind: input, shape index: {}]   ;;  %s3372_s1 = inlined_call_operand.vmem [shape: f32[32,9], index: 1, kind: input, shape index: {}]   ;;  %s3373_s2 = inlined_call_operand.vmem [shape: f32[32,1], index: 2, kind: input, shape index: {}]   ;;  %s3374_s3 = inlined_call_operand.vmem [shape: bf16[32,32], index: 3, kind: input, shape index: {}]   ;;  %s3375_s4 = inlined_call_operand.vmem [shape: f32[32,1], index: 4, kind: input, shape index: {}]   ;;  %s3376_s5 = inlined_call_operand.vmem [shape: bf16[32,32], index: 5, kind: input, shape index: {}]   ;;  %s3377_s6 = inlined_call_operand.vmem [shape: f32[32,1], index: 6, kind: input, shape index: {}]   ;;  %s3378_s7 = inlined_call_operand.vmem [shape: f32[2,32,384], index: 7, kind: output, shape index: {}]  }
   0x1   :  { %s2173_s26 = smov 0  }
   0x2 LB: > { %s29_s27 = sadd.s32 1, %s2105_s25  ;;  %p1930_p0 = scmp.ge.s32.totalorder %s2109_s26, 1  ;;  %s2109_s26 = sphi %s2173_s26, %s17_s26   ;;  %s2105_s25 = sphi %s2171_s25, %s3450_s25   ;;  %s2101_s24 = sphi %s2169_s24, %s3449_s24  }
   0x3   : > { %p31_p1 = scmp.ge.s32.totalorder %s29_s27, 2  ;;  %p258_p2 = scmp.lt.s32.totalorder %s2109_s26, 3 }
   0x5   : > { %s3452_s27 = smov (%p31_p1, %s29_s27), 0  ;;  %p259_p3 = pnand %p1930_p0, %p258_p2 }
   0x7   : > { %262 = sbr.rel (%p259_p3) target bundleno = 1381 (0x565), region = 48 }
   0xc   : > { %v2192_v0 = vld [vmem:[%s3372_s1 + $0x10] sm:$0xff]  ;;  %v2197_v1 = vld [vmem:[%s3372_s1] sm:$0xff]  ;;  %v2111_v2 = vmov 1   ;;  %v3379_v3 = vmov 0   ;;  %v2206_v4 = vld [vmem:[%s3372_s1 + $0x18] sm:$0xff]  ;;  %v2113_v6 = vmov 2  }
   0xd   : > { %2018 = vset.pattern.permute.xlu0 %v2111_v2  ;;  %2017 = vset.pattern.permute.xlu2 %v2111_v2  ;;  %v2211_v5 = vld [vmem:[%s3372_s1 + $0x8] sm:$0xff]  ;;  %p299_p4 = scmp.lt.s32.totalorder %s2101_s24, 1  ;;  %s2114_s17 = smov 127   ;;  %v2116_v49 = vmov 3   ;;  %vm463_vm0 = vcmask 1039360   ;;  %vm580_vm1 = vcmask 1031168  }
   0xe   : > { %2016 = vset.pattern.permute.xlu1 %v3379_v3  ;;  %392 = vperm.xlu0 %2018, %v2192_v0   ;;  %s2115_s18 = smov 126   ;;  %s2119_s19 = smov 110   ;;  %vm697_vm2 = vcmask 900096   ;;  %vm814_vm3 = vcmask 891904   ;;  %vm931_vm4 = vcmask 883712   ;;  %vm1048_vm5 = vcmask 752640  }
   0xf   : > { %347 = vperm.xlu1 %2016, %v2192_v0   ;;  %384 = vperm.xlu2 %2017, %v2197_v1   ;;  %s3454_s24 = smov (!%p299_p4, %s2101_s24), 1  ;;  %s2123_s20 = smov 109   ;;  %vm1165_vm6 = vcmask 744448   ;;  %vm1282_vm7 = vcmask 736256   ;;  %vm1399_vm8 = vcmask 261120   ;;  %vm1714_vm9 = vcmask 154624  }
  0x10   : > { %s1964_s13 = sshll.u32 %s3454_s24, 7  ;;  %s2124_s21 = smov 108  }
  0x11   : > { %s2228_s16 = scalar_lea.vmem %s3371_s0, %s1964_s13  ;;  %s2125_s22 = smov 92  }
  0x12   : > { %v2231_v7 = vld [vmem:[%s2228_s16 + $0x18] sm:$0xff]  ;;  %v2234_v8 = vld [vmem:[%s2228_s16 + $0x8] sm:$0xff]  ;;  %v2237_v9 = vld [vmem:[%s2228_s16] sm:$0xff]  ;;  %s2126_s23 = smov 91   ;;  %s2127_s28 = smov 90  }
  0x13   : > { %3404 = vst [vmem:[#allocation2_spill] sm:$0xff] %v2231_v7  ;;  %v2246_v14 = vld [vmem:[%s2228_s16 + $0x10] sm:$0xff]  ;;  %v2252_v16 = vld [vmem:[%s2228_s16 + $0x20] sm:$0xff]  ;;  %v2261_v21 = vld [vmem:[%s2228_s16 + $0x38] sm:$0xff]  ;;  %s1973_s29 = smul.u32 96, %s3454_s24 }
  0x14   : > { %3405 = vst [vmem:[#allocation3_spill] sm:$0xff] %v2246_v14  ;;  %v2249_v15 = vld [vmem:[%s2228_s16 + $0x30] sm:$0xff]  ;;  %v2264_v22 = vld [vmem:[%s2228_s16 + $0x28] sm:$0xff]  ;;  %v2271_v25 = vld [vmem:[%s2228_s16 + $0x40] sm:$0xff] }
  0x15   : > { %3406 = vst [vmem:[#allocation4_spill] sm:$0xff] %v2261_v21  ;;  %v2274_v26 = vld [vmem:[%s2228_s16 + $0x48] sm:$0xff]  ;;  %v2277_v27 = vld [vmem:[%s2228_s16 + $0x50] sm:$0xff]  ;;  %v2288_v33 = vld [vmem:[%s2228_s16 + $0x58] sm:$0xff]  ;;  %s3336_s8 = scalar_lea.vmem %s3378_s7, %s1973_s29 }
  0x16   : > { %2022 = vset.pattern.permute.xlu0 %v2113_v6  ;;  %v2295_v36 = vld [vmem:[%s2228_s16 + $0x60] sm:$0xff]  ;;  %v2298_v37 = vld [vmem:[%s2228_s16 + $0x68] sm:$0xff]  ;;  %v2301_v39 = vld [vmem:[%s2228_s16 + $0x70] sm:$0xff] }
  0x17   : > { %352 = vperm.xlu1 %2016, %v2206_v4   ;;  %388 = vperm.xlu2 %2017, %v2211_v5   ;;  %v2310_v43 = vld [vmem:[%s2228_s16 + $0x78] sm:$0xff] }
  0x18   : > { %509 = vperm.xlu0 %2022, %v2192_v0  }
  0x1f   : > { %2019 = vset.pattern.permute.xlu1 %v2111_v2  ;;  %2021 = vset.pattern.permute.xlu2 %v2113_v6 }
  0x20   : > { %396 = vperm.xlu1 %2019, %v2206_v4   ;;  %505 = vperm.xlu2 %2021, %v2211_v5  }
  0x21   : > { %2025 = vset.pattern.permute.xlu0 %v2116_v49 }
  0x28   : > { %2020 = vset.pattern.permute.xlu1 %v2113_v6  ;;  %2024 = vset.pattern.permute.xlu2 %v2116_v49 }
  0x29   : > { %501 = vperm.xlu1 %2020, %v2197_v1  }
  0x31   : > { %513 = vperm.xlu1 %2020, %v2206_v4  }
  0x39   : > { %2023 = vset.pattern.permute.xlu1 %v2116_v49 }
  0x69   : > { %v385_v10 = vpop.permute.xlu2 %384 }
  0x6a   : > { %v402_v11 = vmul.f32 %v385_v10, %v2231_v7  ;;  %v400_v12 = vmul.f32 %v385_v10, %v2234_v8  ;;  %v399_v13 = vmul.f32 %v385_v10, %v2237_v9  ;;  %v401_v18 = vmul.f32 %v385_v10, %v2246_v14 }
  0x6c   : > { %437 = vrot.lane.b32.xlu0 %v402_v11, %s2114_s17  ;;  %433 = vrot.lane.b32.xlu1 %v400_v12, %s2114_s17 }
  0x6d   : > { %431 = vrot.lane.b32.xlu2 %v399_v13, %s2114_s17 }
  0x71   : > { %v389_v17 = vpop.permute.xlu2 %388 }
  0x72   : > { %v405_v19 = vmul.f32 %v389_v17, %v2249_v15  ;;  %v403_v20 = vmul.f32 %v389_v17, %v2252_v16  ;;  %v406_v23 = vmul.f32 %v389_v17, %v2261_v21  ;;  %v404_v24 = vmul.f32 %v389_v17, %v2264_v22 }
  0x74   : > { %443 = vrot.lane.b32.xlu0 %v405_v19, %s2114_s17  ;;  %439 = vrot.lane.b32.xlu1 %v403_v20, %s2114_s17 }
  0x75   : > { %435 = vrot.lane.b32.xlu2 %v401_v18, %s2114_s17 }
  0x7a   : > { %v506_v48 = vpop.permute.xlu2 %505 }
  0x7b   : > { %v520_v50 = vmul.f32 %v506_v48, %v2252_v16  ;;  %v522_v53 = vmul.f32 %v506_v48, %v2249_v15  ;;  %v523_v54 = vmul.f32 %v506_v48, %v2261_v21  ;;  %v521_v55 = vmul.f32 %v506_v48, %v2264_v22 }
  0x7c   : > { %445 = vrot.lane.b32.xlu1 %v406_v23, %s2114_s17 }
  0x7d   : > { %441 = vrot.lane.b32.xlu2 %v404_v24, %s2114_s17 }
  0x80   : > { %v393_v28 = vpop.permute.xlu0 %392 }
  0x81   : > { %v2279_v29 = vpop.permute.xlu1 %347  ;;  %v408_v30 = vmul.f32 %v393_v28, %v2274_v26  ;;  %v409_v31 = vmul.f32 %v393_v28, %v2277_v27  ;;  %v407_v32 = vmul.f32 %v393_v28, %v2271_v25  ;;  %v410_v35 = vmul.f32 %v393_v28, %v2288_v33 }
  0x83   : > { %449 = vrot.lane.b32.xlu0 %v408_v30, %s2114_s17 }
  0x84   : > { %451 = vrot.lane.b32.xlu1 %v409_v31, %s2114_s17 }
  0x85   : > { %447 = vrot.lane.b32.xlu2 %v407_v32, %s2114_s17 }
  0x89   : > { %v2290_v34 = vpop.permute.xlu1 %352 }
  0x8a   : > { %v510_v56 = vpop.permute.xlu0 %509 }
  0x8b   : > { %v525_v57 = vmul.f32 %v510_v56, %v2274_v26  ;;  %v526_v58 = vmul.f32 %v510_v56, %v2277_v27  ;;  %v524_v59 = vmul.f32 %v510_v56, %v2271_v25  ;;  %v527_v63 = vmul.f32 %v510_v56, %v2288_v33 }
  0x8d   : > { %453 = vrot.lane.b32.xlu2 %v410_v35, %s2114_s17 }
  0x92   : > { %v397_v38 = vpop.permute.xlu1 %396 }
  0x93   : > { %v411_v40 = vmul.f32 %v397_v38, %v2295_v36  ;;  %v412_v41 = vmul.f32 %v397_v38, %v2298_v37  ;;  %v413_v42 = vmul.f32 %v397_v38, %v2301_v39  ;;  %v414_v45 = vmul.f32 %v397_v38, %v2310_v43 }
  0x95   : > { %455 = vrot.lane.b32.xlu0 %v411_v40, %s2114_s17  ;;  %457 = vrot.lane.b32.xlu1 %v412_v41, %s2114_s17 }
  0x96   : > { %459 = vrot.lane.b32.xlu2 %v413_v42, %s2114_s17 }
  0x9b   : > { %v502_v44 = vpop.permute.xlu1 %501 }
  0x9c   : > { %v517_v46 = vmul.f32 %v502_v44, %v2234_v8  ;;  %v516_v47 = vmul.f32 %v502_v44, %v2237_v9  ;;  %v519_v51 = vmul.f32 %v502_v44, %v2231_v7  ;;  %v518_v52 = vmul.f32 %v502_v44, %v2246_v14 }
  0x9d   : > { %461 = vrot.lane.b32.xlu0 %v414_v45, %s2114_s17 }
  0x9e   : > { %550 = vrot.lane.b32.xlu1 %v517_v46, %s2115_s18  ;;  %548 = vrot.lane.b32.xlu2 %v516_v47, %s2115_s18 }
  0xa3   : > { %v514_v60 = vpop.permute.xlu1 %513 }
  0xa4   : > { %v528_v61 = vmul.f32 %v514_v60, %v2295_v36  ;;  %v529_v62 = vmul.f32 %v514_v60, %v2298_v37  ;;  %v531_v2 = vmul.f32 %v514_v60, %v2310_v43  ;;  %v530_v6 = vmul.f32 %v514_v60, %v2301_v39 }
  0xa5   : > { %554 = vrot.lane.b32.xlu0 %v519_v51, %s2115_s18 }
  0xa6   : > { %556 = vrot.lane.b32.xlu1 %v520_v50, %s2115_s18  ;;  %552 = vrot.lane.b32.xlu2 %v518_v52, %s2115_s18  ;;  %v2117_v52 = vmov 4  }
  0xad   : > { %560 = vrot.lane.b32.xlu0 %v522_v53, %s2115_s18  ;;  %v362_v53 = vmul.f32 %v2279_v29, %v2274_v26 }
  0xae   : > { %562 = vrot.lane.b32.xlu1 %v523_v54, %s2115_s18  ;;  %558 = vrot.lane.b32.xlu2 %v521_v55, %s2115_s18  ;;  %v363_v54 = vmul.f32 %v2279_v29, %v2277_v27 }
  0xb5   : > { %566 = vrot.lane.b32.xlu0 %v525_v57, %s2115_s18 }
  0xb6   : > { %568 = vrot.lane.b32.xlu1 %v526_v58, %s2115_s18  ;;  %564 = vrot.lane.b32.xlu2 %v524_v59, %s2115_s18 }
  0xbd   : > { %572 = vrot.lane.b32.xlu0 %v528_v61, %s2115_s18 }
  0xbe   : > { %574 = vrot.lane.b32.xlu1 %v529_v62, %s2115_s18  ;;  %570 = vrot.lane.b32.xlu2 %v527_v63, %s2115_s18 }
  0xc5   : > { %578 = vrot.lane.b32.xlu0 %v531_v2, %s2115_s18 }
  0xc6   : > { %618 = vperm.xlu1 %2023, %v2197_v1   ;;  %576 = vrot.lane.b32.xlu2 %v530_v6, %s2115_s18  ;;  %v2118_v6 = vmov 5  }
  0xc7   : > { %v2347_v10 = vpop.permute.xlu2 %431 }
  0xcd   : > { %626 = vperm.xlu0 %2025, %v2192_v0  }
  0xce   : > { %630 = vperm.xlu1 %2023, %v2206_v4   ;;  %622 = vperm.xlu2 %2024, %v2211_v5  }
  0xcf   : > { %v2352_v11 = vpop.permute.xlu2 %435 }
  0xd5   : > { %2027 = vset.pattern.permute.xlu0 %v2117_v52 }
  0xd6   : > { %2026 = vset.pattern.permute.xlu2 %v2117_v52  ;;  %2028 = vset.pattern.permute.xlu1 %v2118_v6 }
  0xd7   : > { %v2354_v12 = vpop.permute.xlu2 %441 }
  0xde   : > { %v2358_v17 = vpop.permute.xlu1 %433  ;;  %v2362_v20 = vpop.permute.xlu0 %437 }
  0xdf   : > { %v2356_v13 = vpop.permute.xlu2 %447 }
  0xe6   : > { %v2360_v19 = vpop.permute.xlu1 %439  ;;  %v2366_v28 = vpop.permute.xlu0 %443 }
  0xe7   : > { %v454_v18 = vpop.permute.xlu2 %453 }
  0xee   : > { %v2364_v24 = vpop.permute.xlu1 %445 }
  0xf0   : > { %v460_v23 = vpop.permute.xlu2 %459 }
  0xf5   : > { %v2370_v31 = vpop.permute.xlu0 %449 }
  0xf6   : > { %v452_v32 = vpop.permute.xlu1 %451 }
  0xf7   : > { %v471_v50 = vsel %vm463_vm0, %v2370_v31, %v452_v32  ;;  %v472_v51 = vsel %vm463_vm0, %v452_v32, %v454_v18  ;;  %v365_v18 = vmul.f32 %v2290_v34, %v2298_v37 }
  0xf8   : > { %v2368_v30 = vpop.permute.xlu2 %548  ;;  %v495_v57 = vadd.f32 %v471_v50, %v362_v53  ;;  %v496_v58 = vadd.f32 %v472_v51, %v363_v54 }
 0x100   : > { %v2376_v40 = vpop.permute.xlu2 %552 }
 0x107   : > { %v2372_v35 = vpop.permute.xlu0 %455  ;;  %v2374_v38 = vpop.permute.xlu1 %457 }
 0x108   : > { %v2380_v44 = vpop.permute.xlu2 %558  ;;  %v474_v2 = vsel %vm463_vm0, %v2374_v38, %v460_v23 }
 0x109   : > { %v498_v50 = vadd.f32 %v474_v2, %v365_v18 }
 0x10f   : > { %v462_v41 = vpop.permute.xlu0 %461 }
 0x110   : > { %v2378_v42 = vpop.permute.xlu1 %550  ;;  %v2386_v47 = vpop.permute.xlu2 %564 }
 0x117   : > { %v2382_v45 = vpop.permute.xlu0 %554 }
 0x118   : > { %v2384_v46 = vpop.permute.xlu1 %556  ;;  %v571_v55 = vpop.permute.xlu2 %570 }
 0x119   : > { %3407 = vst [vmem:[#allocation5_spill] sm:$0xff] %v2384_v46 }
 0x11f   : > { %v2388_v48 = vpop.permute.xlu0 %560 }
 0x120   : > { %v2390_v49 = vpop.permute.xlu1 %562  ;;  %v577_v51 = vpop.permute.xlu2 %576 }
 0x127   : > { %v2399_v56 = vpop.permute.xlu0 %566 }
 0x128   : > { %v569_v59 = vpop.permute.xlu1 %568 }
 0x129   : > { %v588_v60 = vsel %vm580_vm1, %v2399_v56, %v569_v59  ;;  %v589_v61 = vsel %vm580_vm1, %v569_v59, %v571_v55 }
 0x12a   : > { %v2404_v62 = vadd.f32 %v588_v60, %v495_v57  ;;  %v2406_v63 = vadd.f32 %v589_v61, %v496_v58  ;;  %v475_v57 = vsel %vm463_vm0, %v460_v23, %v462_v41  ;;  %v366_v58 = vmul.f32 %v2301_v39, %v2290_v34  ;;  %v623_v23 = vpop.permute.xlu2 %622 }
 0x12b   : > { %v639_v41 = vmul.f32 %v623_v23, %v2249_v15 }
 0x12c   : > { %3408 = vst [vmem:[#allocation6_spill] sm:$0xff] %v2404_v62  ;;  %v499_v59 = vadd.f32 %v475_v57, %v366_v58  ;;  %v638_v57 = vmul.f32 %v623_v23, %v2264_v22  ;;  %v2122_v58 = vmov 8  }
 0x12d   : > { %3409 = vst [vmem:[#allocation7_spill] sm:$0xff] %v2406_v63 }
 0x12f   : > { %v2412_v32 = vpop.permute.xlu0 %572 }
 0x130   : > { %v2414_v53 = vpop.permute.xlu1 %574 }
 0x131   : > { %v591_v54 = vsel %vm580_vm1, %v2414_v53, %v577_v51 }
 0x132   : > { %v2418_v55 = vadd.f32 %v591_v54, %v498_v50  ;;  %v637_v50 = vmul.f32 %v623_v23, %v2252_v16  ;;  %v640_v54 = vmul.f32 %v623_v23, %v2261_v21 }
 0x134   : > { %3410 = vst [vmem:[#allocation8_spill] sm:$0xff] %v2418_v55 }
 0x137   : > { %v579_v60 = vpop.permute.xlu0 %578 }
 0x138   : > { %v592_v61 = vsel %vm580_vm1, %v577_v51, %v579_v60  ;;  %v619_v3 = vpop.permute.xlu1 %618 }
 0x139   : > { %v2424_v63 = vadd.f32 %v592_v61, %v499_v59  ;;  %v636_v2 = vmul.f32 %v619_v3, %v2231_v7  ;;  %v634_v18 = vmul.f32 %v619_v3, %v2234_v8  ;;  %v633_v62 = vmul.f32 %v619_v3, %v2237_v9 }
 0x13a   : > { %v635_v51 = vmul.f32 %v619_v3, %v2246_v14  ;;  %v2121_v3 = vmov 7   ;;  %v3412_v59 = vmov 0  }
 0x13b   : > { %3411 = vst [vmem:[#allocation9_spill] sm:$0xff] %v2424_v63  ;;  %671 = vrot.lane.b32.xlu0 %v636_v2, %s2119_s19  ;;  %667 = vrot.lane.b32.xlu1 %v634_v18, %s2119_s19 }
 0x13c   : > { %665 = vrot.lane.b32.xlu2 %v633_v62, %s2119_s19  ;;  %v2120_v62 = vmov 6  }
 0x143   : > { %677 = vrot.lane.b32.xlu0 %v639_v41, %s2119_s19  ;;  %673 = vrot.lane.b32.xlu1 %v637_v50, %s2119_s19 }
 0x144   : > { %669 = vrot.lane.b32.xlu2 %v635_v51, %s2119_s19 }
 0x14b   : > { %747 = vperm.xlu0 %2027, %v2206_v4   ;;  %679 = vrot.lane.b32.xlu1 %v640_v54, %s2119_s19 }
 0x14c   : > { %675 = vrot.lane.b32.xlu2 %v638_v57, %s2119_s19 }
 0x153   : > { %2032 = vset.pattern.permute.xlu0 %v2120_v62  ;;  %860 = vperm.xlu1 %2028, %v2192_v0  }
 0x154   : > { %743 = vperm.xlu2 %2026, %v2192_v0   ;;  %977 = vperm.xlu0 %2032, %v2192_v0  }
 0x15b   : > { %2030 = vset.pattern.permute.xlu1 %v2117_v52 }
 0x15c   : > { %2029 = vset.pattern.permute.xlu2 %v2118_v6  ;;  %2037 = vset.pattern.permute.xlu0 %v2121_v3 }
 0x15d   : > { %864 = vperm.xlu2 %2029, %v2206_v4   ;;  %735 = vperm.xlu1 %2030, %v2197_v1  }
 0x15e   : > { %1098 = vperm.xlu0 %2037, %v2206_v4  }
 0x165   : > { %2031 = vset.pattern.permute.xlu2 %v2117_v52  ;;  %2033 = vset.pattern.permute.xlu1 %v2120_v62  ;;  %v2464_v52 = vpop.permute.xlu0 %626 }
 0x166   : > { %1086 = vperm.xlu0 %2037, %v2197_v1   ;;  %739 = vperm.xlu2 %2031, %v2211_v5  }
 0x167   : > { %981 = vperm.xlu1 %2033, %v2206_v4  }
 0x16e   : > { %2043 = vset.pattern.permute.xlu0 %v2122_v58  ;;  %2034 = vset.pattern.permute.xlu2 %v2118_v6 }
 0x16f   : > { %2035 = vset.pattern.permute.xlu1 %v2118_v6  ;;  %1207 = vperm.xlu0 %2043, %v2211_v5   ;;  %v641_v6 = vmul.f32 %v2464_v52, %v2271_v25 }
 0x170   : > { %852 = vperm.xlu2 %2034, %v2197_v1   ;;  %856 = vperm.xlu1 %2035, %v2211_v5  }
 0x177   : > { %2044 = vset.pattern.permute.xlu0 %v3412_v59 }
 0x178   : > { %2036 = vset.pattern.permute.xlu2 %v2121_v3  ;;  %2038 = vset.pattern.permute.xlu1 %v2120_v62 }
 0x179   : > { %337 = vperm.xlu0 %2044, %v2197_v1   ;;  %1094 = vperm.xlu2 %2036, %v2192_v0  }
 0x17a   : > { %969 = vperm.xlu1 %2038, %v2197_v1  }
 0x181   : > { %342 = vperm.xlu0 %2044, %v2211_v5   ;;  %2039 = vset.pattern.permute.xlu2 %v2120_v62 }
 0x182   : > { %2040 = vset.pattern.permute.xlu1 %v2122_v58  ;;  %973 = vperm.xlu2 %2039, %v2211_v5  }
 0x183   : > { %1211 = vperm.xlu1 %2040, %v2192_v0   ;;  %v2473_v0 = vpop.permute.xlu1 %630 }
 0x184   : > { %v646_v61 = vmul.f32 %v2473_v0, %v2298_v37 }
 0x18a   : > { %2041 = vset.pattern.permute.xlu2 %v2122_v58 }
 0x18b   : > { %2042 = vset.pattern.permute.xlu1 %v2121_v3  ;;  %1215 = vperm.xlu2 %2041, %v2206_v4   ;;  %v642_v4 = vmul.f32 %v2464_v52, %v2274_v26 }
 0x18c   : > { %1090 = vperm.xlu1 %2042, %v2211_v5   ;;  %v645_v5 = vmul.f32 %v2473_v0, %v2295_v36 }
 0x193   : > { %1203 = vperm.xlu2 %2041, %v2197_v1  }
 0x194   : > { %681 = vrot.lane.b32.xlu1 %v641_v6, %s2119_s19 }
 0x195   : > { %2045 = vset.pattern.permute.xlu1 %v3412_v59 }
 0x196   : > { %v2471_v60 = vpop.permute.xlu2 %665 }
 0x197   : > { %3413 = vst [vmem:[#allocation10_spill] sm:$0xff] %v2471_v60 }
 0x19b   : > { %683 = vrot.lane.b32.xlu2 %v642_v4, %s2119_s19 }
 0x19c   : > { %689 = vrot.lane.b32.xlu1 %v645_v5, %s2119_s19  ;;  %2046 = vset.pattern.permute.xlu2 %v3412_v59 }
 0x19e   : > { %v2482_v1 = vpop.permute.xlu2 %669 }
 0x19f   : > { %3414 = vst [vmem:[#allocation11_spill] sm:$0xff] %v2482_v1 }
 0x1a3   : > { %691 = vrot.lane.b32.xlu2 %v646_v61, %s2119_s19 }
 0x1a6   : > { %v2487_v2 = vpop.permute.xlu2 %675 }
 0x1ad   : > { %v2489_v18 = vpop.permute.xlu0 %671  ;;  %v2491_v23 = vpop.permute.xlu1 %667 }
 0x1ae   : > { %3415 = vst [vmem:[#allocation12_spill] sm:$0xff] %v2489_v18  ;;  %v2493_v41 = vpop.permute.xlu2 %743 }
 0x1af   : > { %v759_v50 = vmul.f32 %v2493_v41, %v2274_v26  ;;  %v758_v51 = vmul.f32 %v2493_v41, %v2271_v25 }
 0x1b1   : > { %800 = vrot.lane.b32.xlu1 %v759_v50, %s2123_s20  ;;  %798 = vrot.lane.b32.xlu0 %v758_v51, %s2123_s20 }
 0x1b5   : > { %v2501_v54 = vpop.permute.xlu0 %677  ;;  %v2503_v57 = vpop.permute.xlu1 %673 }
 0x1b6   : > { %3416 = vst [vmem:[#allocation13_spill] sm:$0xff] %v2503_v57 }
 0x1b7   : > { %v2515_v6 = vpop.permute.xlu2 %864 }
 0x1b8   : > { %3417 = vst [vmem:[#allocation14_spill] sm:$0xff] %v2515_v6  ;;  %v879_v5 = vmul.f32 %v2515_v6, %v2295_v36 }
 0x1bd   : > { %v2505_v62 = vpop.permute.xlu0 %747  ;;  %v2507_v3 = vpop.permute.xlu1 %679 }
 0x1be   : > { %v762_v58 = vmul.f32 %v2505_v62, %v2295_v36  ;;  %v763_v59 = vmul.f32 %v2505_v62, %v2298_v37 }
 0x1c0   : > { %806 = vrot.lane.b32.xlu2 %v762_v58, %s2123_s20  ;;  %808 = vrot.lane.b32.xlu0 %v763_v59, %s2123_s20  ;;  %v2530_v58 = vpop.permute.xlu2 %739  ;;  %v880_v59 = vmul.f32 %v2515_v6, %v2298_v37 }
 0x1c1   : > { %3419 = vst [vmem:[#allocation16_spill] sm:$0xff] %v2530_v58  ;;  %v755_v55 = vmul.f32 %v2530_v58, %v2264_v22 }
 0x1c5   : > { %v2517_v4 = vpop.permute.xlu1 %860 }
 0x1c6   : > { %v876_v61 = vmul.f32 %v2517_v4, %v2274_v26  ;;  %v875_v50 = vmul.f32 %v2517_v4, %v2271_v25  ;;  %v2525_v51 = vpop.permute.xlu0 %977 }
 0x1c7   : > { %3418 = vst [vmem:[#allocation15_spill] sm:$0xff] %v2525_v51 }
 0x1c8   : > { %917 = vrot.lane.b32.xlu2 %v876_v61, %s2124_s21  ;;  %915 = vrot.lane.b32.xlu1 %v875_v50, %s2124_s21 }
 0x1c9   : > { %923 = vrot.lane.b32.xlu0 %v879_v5, %s2124_s21  ;;  %v754_v5 = vmul.f32 %v2530_v58, %v2252_v16 }
 0x1ca   : > { %v2547_v50 = vpop.permute.xlu2 %852 }
 0x1cb   : > { %3421 = vst [vmem:[#allocation18_spill] sm:$0xff] %v2547_v50 }
 0x1cf   : > { %v2534_v18 = vpop.permute.xlu1 %735 }
 0x1d0   : > { %3420 = vst [vmem:[#allocation17_spill] sm:$0xff] %v2534_v18  ;;  %925 = vrot.lane.b32.xlu1 %v880_v59, %s2124_s21  ;;  %v2537_v1 = vpop.permute.xlu0 %1098  ;;  %v750_v63 = vmul.f32 %v2534_v18, %v2237_v9  ;;  %v751_v61 = vmul.f32 %v2534_v18, %v2234_v8  ;;  %v992_v59 = vmul.f32 %v2525_v51, %v2271_v25 }
 0x1d2   : > { %782 = vrot.lane.b32.xlu2 %v750_v63, %s2123_s20  ;;  %784 = vrot.lane.b32.xlu0 %v751_v61, %s2123_s20  ;;  %v993_v61 = vmul.f32 %v2525_v51, %v2274_v26 }
 0x1d3   : > { %v2566_v6 = vpop.permute.xlu2 %1094 }
 0x1d4   : > { %v1110_v46 = vmul.f32 %v2566_v6, %v2274_v26  ;;  %v1109_v60 = vmul.f32 %v2566_v6, %v2271_v25 }
 0x1d8   : > { %790 = vrot.lane.b32.xlu1 %v754_v5, %s2123_s20  ;;  %v2554_v7 = vpop.permute.xlu0 %1086 }
 0x1d9   : > { %v2558_v63 = vpop.permute.xlu1 %981 }
 0x1da   : > { %1032 = vrot.lane.b32.xlu0 %v992_v59, %s2125_s22  ;;  %792 = vrot.lane.b32.xlu2 %v755_v55, %s2123_s20  ;;  %3422 = vst [vmem:[#allocation19_spill] sm:$0xff] %v2558_v63  ;;  %v997_v21 = vmul.f32 %v2558_v63, %v2298_v37  ;;  %v996_v58 = vmul.f32 %v2558_v63, %v2295_v36 }
 0x1db   : > { %v867_v55 = vmul.f32 %v2547_v50, %v2237_v9  ;;  %v868_v63 = vmul.f32 %v2547_v50, %v2234_v8 }
 0x1e0   : > { %1034 = vrot.lane.b32.xlu1 %v993_v61, %s2125_s22  ;;  %v2582_v61 = vpop.permute.xlu2 %973 }
 0x1e1   : > { %v2569_v5 = vpop.permute.xlu0 %1207 }
 0x1e2   : > { %1042 = vrot.lane.b32.xlu0 %v997_v21, %s2125_s22  ;;  %1040 = vrot.lane.b32.xlu2 %v996_v58, %s2125_s22  ;;  %v2575_v59 = vpop.permute.xlu1 %856 }
 0x1e3   : > { %3423 = vst [vmem:[#allocation20_spill] sm:$0xff] %v2575_v59  ;;  %v871_v51 = vmul.f32 %v2575_v59, %v2252_v16  ;;  %v872_v18 = vmul.f32 %v2575_v59, %v2264_v22  ;;  %v582_v59 = vsel %vm580_vm1, %v2378_v42, %v2376_v40 }
 0x1e8   : > { %899 = vrot.lane.b32.xlu1 %v867_v55, %s2124_s21  ;;  %v466_v55 = vsel %vm463_vm0, %v2352_v11, %v2362_v20  ;;  %v583_v20 = vsel %vm580_vm1, %v2376_v40, %v2382_v45 }
 0x1ea   : > { %907 = vrot.lane.b32.xlu0 %v871_v51, %s2124_s21  ;;  %901 = vrot.lane.b32.xlu2 %v868_v63, %s2124_s21  ;;  %v465_v51 = vsel %vm463_vm0, %v2358_v17, %v2352_v11 }
 0x1eb   : > { %v2586_v21 = vpop.permute.xlu0 %337 }
 0x1ec   : > { %v356_v58 = vmul.f32 %v2234_v8, %v2586_v21  ;;  %v357_v57 = vmul.f32 %v2246_v14, %v2586_v21 }
 0x1ee   : > { %v489_v63 = vadd.f32 %v465_v51, %v356_v58  ;;  %v490_v50 = vadd.f32 %v466_v55, %v357_v57  ;;  %v2617_v57 = vpop.permute.xlu1 %969  ;;  %v2621_v55 = vpop.permute.xlu2 %1215 }
 0x1ef   : > { %v984_v51 = vmul.f32 %v2617_v57, %v2237_v9 }
 0x1f0   : > { %909 = vrot.lane.b32.xlu1 %v872_v18, %s2124_s21  ;;  %v2611_v14 = vadd.f32 %v582_v59, %v489_v63  ;;  %v2613_v11 = vadd.f32 %v583_v20, %v490_v50  ;;  %v1113_v18 = vmul.f32 %v2537_v1, %v2295_v36  ;;  %v1114_v63 = vmul.f32 %v2537_v1, %v2298_v37 }
 0x1f1   : > { %v585_v20 = vsel %vm580_vm1, %v2380_v44, %v2388_v48 }
 0x1f2   : > { %3424 = vst [vmem:[#allocation21_spill] sm:$0xff] %v2613_v11  ;;  %1151 = vrot.lane.b32.xlu0 %v1110_v46, %s2126_s23  ;;  %1149 = vrot.lane.b32.xlu2 %v1109_v60, %s2126_s23  ;;  %v468_v46 = vsel %vm463_vm0, %v2354_v12, %v2366_v28  ;;  %v469_v60 = vsel %vm463_vm0, %v2366_v28, %v2364_v24 }
 0x1f3   : > { %v2619_v58 = vpop.permute.xlu0 %342  ;;  %v586_v11 = vsel %vm580_vm1, %v2388_v48, %v2390_v49  ;;  %v985_v49 = vmul.f32 %v2617_v57, %v2234_v8 }
 0x1f4   : > { %v359_v40 = vmul.f32 %v2264_v22, %v2619_v58  ;;  %v360_v45 = vmul.f32 %v2249_v15, %v2619_v58 }
 0x1f6   : > { %v492_v50 = vadd.f32 %v468_v46, %v359_v40  ;;  %v493_v59 = vadd.f32 %v469_v60, %v360_v45  ;;  %v702_v40 = vsel %vm697_vm2, %v2487_v2, %v2501_v54  ;;  %v703_v45 = vsel %vm697_vm2, %v2501_v54, %v2507_v3 }
 0x1f7   : > { %v989_v60 = vmul.f32 %v2582_v61, %v2264_v22  ;;  %v988_v54 = vmul.f32 %v2582_v61, %v2252_v16 }
 0x1f8   : > { %1157 = vrot.lane.b32.xlu1 %v1113_v18, %s2126_s23  ;;  %v609_v24 = vadd.f32 %v585_v20, %v492_v50  ;;  %v610_v28 = vadd.f32 %v586_v11, %v493_v59  ;;  %v2660_v11 = vpop.permute.xlu1 %1211  ;;  %v2662_v18 = vpop.permute.xlu2 %1203  ;;  %v1230_v59 = vmul.f32 %v2621_v55, %v2295_v36  ;;  %v1231_v20 = vmul.f32 %v2621_v55, %v2298_v37 }
 0x1f9   : > { %v1226_v3 = vmul.f32 %v2660_v11, %v2271_v25  ;;  %v1227_v50 = vmul.f32 %v2660_v11, %v2274_v26  ;;  %v1101_v26 = vmul.f32 %v2554_v7, %v2237_v9 }
 0x1fa   : > { %1016 = vrot.lane.b32.xlu0 %v984_v51, %s2125_s22  ;;  %1159 = vrot.lane.b32.xlu2 %v1114_v63, %s2126_s23  ;;  %v2654_v46 = vadd.f32 %v702_v40, %v609_v24  ;;  %v2656_v48 = vadd.f32 %v703_v45, %v610_v28  ;;  %v1102_v24 = vmul.f32 %v2554_v7, %v2234_v8 }
 0x200   : > { %1018 = vrot.lane.b32.xlu1 %v985_v49, %s2125_s22  ;;  %v2677_v51 = vpop.permute.xlu1 %1090  ;;  %v2679_v63 = vpop.permute.xlu2 %683  ;;  %v1321_v49 = vld [vmem:[%s3373_s2 + $0x10] sm:$0xff] }
 0x201   : > { %v1105_v45 = vmul.f32 %v2677_v51, %v2252_v16  ;;  %v1106_v37 = vmul.f32 %v2677_v51, %v2264_v22 }
 0x202   : > { %1026 = vrot.lane.b32.xlu0 %v989_v60, %s2125_s22  ;;  %1024 = vrot.lane.b32.xlu2 %v988_v54, %s2125_s22 }
 0x208   : > { %1266 = vrot.lane.b32.xlu1 %v1226_v3, %s2127_s28  ;;  %v682_v28 = vpop.permute.xlu1 %681  ;;  %v2691_v40 = vpop.permute.xlu2 %691  ;;  %v470_v3 = vsel %vm463_vm0, %v2356_v13, %v2370_v31  ;;  %v1218_v13 = vmul.f32 %v2662_v18, %v2237_v9 }
 0x20a   : > { %1268 = vrot.lane.b32.xlu2 %v1227_v50, %s2127_s28  ;;  %1274 = vrot.lane.b32.xlu0 %v1230_v59, %s2127_s28  ;;  %v361_v50 = vmul.f32 %v2279_v29, %v2271_v25  ;;  %v1322_v59 = vld [vmem:[%s3373_s2 + $0x18] sm:$0xff] }
 0x210   : > { %1276 = vrot.lane.b32.xlu1 %v1231_v20, %s2127_s28  ;;  %v690_v54 = vpop.permute.xlu1 %689  ;;  %v587_v20 = vsel %vm580_vm1, %v2386_v47, %v2399_v56 }
 0x212   : > { %1133 = vrot.lane.b32.xlu2 %v1101_v26, %s2126_s23  ;;  %1135 = vrot.lane.b32.xlu0 %v1102_v24, %s2126_s23  ;;  %v1223_v26 = vmul.f32 %v2569_v5, %v2264_v22  ;;  %v494_v24 = vadd.f32 %v470_v3, %v361_v50  ;;  %v1222_v3 = vmul.f32 %v2569_v5, %v2252_v16 }
 0x213   : > { %v473_v50 = vsel %vm463_vm0, %v2372_v35, %v2374_v38 }
 0x214   : > { %v611_v25 = vadd.f32 %v587_v20, %v494_v24  ;;  %v590_v20 = vsel %vm580_vm1, %v2412_v32, %v2414_v53  ;;  %v643_v24 = vmul.f32 %v2464_v52, %v2277_v27 }
 0x218   : > { %1141 = vrot.lane.b32.xlu1 %v1105_v45, %s2126_s23  ;;  %v704_v45 = vsel %vm697_vm2, %v682_v28, %v2679_v63 }
 0x219   : > { %v728_v31 = vadd.f32 %v704_v45, %v611_v25  ;;  %v707_v45 = vsel %vm697_vm2, %v690_v54, %v2691_v40  ;;  %v648_v25 = vmul.f32 %v2473_v0, %v2310_v43 }
 0x21a   : > { %1143 = vrot.lane.b32.xlu2 %v1106_v37, %s2126_s23  ;;  %1335 = vperm.xlu0 %2044, %v1321_v49   ;;  %v807_v60 = vpop.permute.xlu2 %806  ;;  %v1219_v37 = vmul.f32 %v2662_v18, %v2234_v8  ;;  %v647_v49 = vmul.f32 %v2473_v0, %v2301_v39  ;;  %v464_v0 = vsel %vm463_vm0, %v2347_v10, %v2358_v17 }
 0x21b   : > { %v878_v10 = vmul.f32 %v2517_v4, %v2288_v33  ;;  %v761_v17 = vmul.f32 %v2493_v41, %v2288_v33 }
 0x220   : > { %1340 = vperm.xlu1 %2045, %v1322_v59   ;;  %v364_v59 = vmul.f32 %v2290_v34, %v2295_v36  ;;  %v644_v34 = vmul.f32 %v2464_v52, %v2288_v33  ;;  %v355_v52 = vmul.f32 %v2237_v9, %v2586_v21 }
 0x222   : > { %1260 = vrot.lane.b32.xlu0 %v1223_v26, %s2127_s28  ;;  %1250 = vrot.lane.b32.xlu2 %v1218_v13, %s2127_s28  ;;  %v2723_v29 = vpop.permute.xlu2 %917  ;;  %v497_v26 = vadd.f32 %v473_v50, %v364_v59  ;;  %v1320_v13 = vld [vmem:[%s3373_s2 + $0x8] sm:$0xff]  ;;  %v760_v50 = vmul.f32 %v2493_v41, %v2277_v27  ;;  %v581_v59 = vsel %vm580_vm1, %v2368_v30, %v2378_v42  ;;  %v3425_v30 = vld [vmem:[#allocation10_spill] sm:$0xff] }
 0x223   : > { %v2725_v47 = vpop.permute.xlu1 %800  ;;  %v799_v22 = vpop.permute.xlu0 %798  ;;  %v698_v42 = vsel %vm697_vm2, %v3425_v30, %v2491_v23  ;;  %v3434_v30 = vld [vmem:[#allocation19_spill] sm:$0xff] }
 0x224   : > { %v821_v56 = vsel %vm814_vm3, %v799_v22, %v2725_v47  ;;  %v614_v35 = vadd.f32 %v590_v20, %v497_v26  ;;  %v764_v22 = vmul.f32 %v2505_v62, %v2301_v39 }
 0x225   : > { %v845_v28 = vadd.f32 %v821_v56, %v728_v31  ;;  %v1319_v31 = vld [vmem:[%s3373_s2] sm:$0xff] }
 0x226   : > { %v731_v36 = vadd.f32 %v707_v45, %v614_v35 }
 0x228   : > { %1252 = vrot.lane.b32.xlu1 %v1219_v37, %s2127_s28 }
 0x22a   : > { %693 = vrot.lane.b32.xlu0 %v647_v49, %s2119_s19  ;;  %1258 = vrot.lane.b32.xlu2 %v1222_v3, %s2127_s28  ;;  %v488_v49 = vadd.f32 %v464_v0, %v355_v52  ;;  %v358_v3 = vmul.f32 %v2252_v16, %v2619_v58  ;;  %v467_v16 = vsel %vm463_vm0, %v2360_v19, %v2354_v12  ;;  %v3426_v19 = vld [vmem:[#allocation5_spill] sm:$0xff] }
 0x22b   : > { %v877_v52 = vmul.f32 %v2517_v4, %v2277_v27  ;;  %v3430_v4 = vld [vmem:[#allocation14_spill] sm:$0xff] }
 0x22c   : > { %v783_v8 = vpop.permute.xlu2 %782  ;;  %v491_v58 = vadd.f32 %v467_v16, %v358_v3  ;;  %v3432_v3 = vld [vmem:[#allocation16_spill] sm:$0xff]  ;;  %v3433_v16 = vld [vmem:[#allocation2_spill] sm:$0xff] }
 0x230   : > { %685 = vrot.lane.b32.xlu1 %v643_v24, %s2119_s19 }
 0x232   : > { %1330 = vperm.xlu0 %2044, %v1320_v13   ;;  %687 = vrot.lane.b32.xlu2 %v644_v34, %s2119_s19  ;;  %v2757_v38 = vpop.permute.xlu0 %808  ;;  %v584_v13 = vsel %vm580_vm1, %v3426_v19, %v2380_v44 }
 0x233   : > { %v824_v32 = vsel %vm814_vm3, %v807_v60, %v2757_v38 }
 0x234   : > { %v848_v53 = vadd.f32 %v824_v32, %v731_v36  ;;  %v2761_v54 = vpop.permute.xlu2 %792  ;;  %v765_v36 = vmul.f32 %v2505_v62, %v2310_v43  ;;  %v608_v32 = vadd.f32 %v584_v13, %v491_v58 }
 0x238   : > { %695 = vrot.lane.b32.xlu1 %v648_v25, %s2119_s19  ;;  %v3428_v25 = vld [vmem:[#allocation17_spill] sm:$0xff] }
 0x239   : > { %v753_v58 = vmul.f32 %v3428_v25, %v3433_v16 }
 0x23a   : > { %810 = vrot.lane.b32.xlu0 %v764_v22, %s2123_s20  ;;  %1325 = vperm.xlu2 %2046, %v1319_v31   ;;  %v916_v60 = vpop.permute.xlu1 %915  ;;  %v3429_v22 = vld [vmem:[#allocation13_spill] sm:$0xff] }
 0x23b   : > { %v938_v56 = vsel %vm931_vm4, %v916_v60, %v2723_v29  ;;  %v924_v37 = vpop.permute.xlu0 %923  ;;  %v701_v44 = vsel %vm697_vm2, %v3429_v22, %v2487_v2  ;;  %v3431_v2 = vld [vmem:[#allocation4_spill] sm:$0xff] }
 0x23c   : > { %v2779_v9 = vadd.f32 %v938_v56, %v845_v28  ;;  %v2781_v21 = vpop.permute.xlu2 %1040  ;;  %v605_v28 = vadd.f32 %v581_v59, %v488_v49  ;;  %v725_v60 = vadd.f32 %v701_v44, %v608_v32  ;;  %v881_v49 = vmul.f32 %v3430_v4, %v2301_v39  ;;  %v3435_v32 = vld [vmem:[#allocation15_spill] sm:$0xff] }
 0x23d   : > { %v882_v59 = vmul.f32 %v3430_v4, %v2310_v43  ;;  %v1111_v4 = vmul.f32 %v2566_v6, %v2277_v27 }
 0x23e   : > { %v722_v45 = vadd.f32 %v698_v42, %v605_v28  ;;  %v998_v42 = vmul.f32 %v3434_v30, %v2301_v39 }
 0x240   : > { %802 = vrot.lane.b32.xlu1 %v760_v50, %s2123_s20  ;;  %v757_v50 = vmul.f32 %v3432_v3, %v3431_v2 }
 0x242   : > { %921 = vrot.lane.b32.xlu0 %v878_v10, %s2124_s21  ;;  %804 = vrot.lane.b32.xlu2 %v761_v17, %s2123_s20  ;;  %v2800_v20 = vpop.permute.xlu1 %925 }
 0x243   : > { %v941_v26 = vsel %vm931_vm4, %v924_v37, %v2800_v20 }
 0x244   : > { %v2807_v41 = vadd.f32 %v941_v26, %v848_v53  ;;  %v2809_v24 = vpop.permute.xlu0 %784  ;;  %v2811_v12 = vpop.permute.xlu2 %901  ;;  %v3427_v53 = vld [vmem:[#allocation3_spill] sm:$0xff]  ;;  %v756_v26 = vmul.f32 %v3432_v3, %v2249_v15 }
 0x245   : > { %v815_v35 = vsel %vm814_vm3, %v783_v8, %v2809_v24  ;;  %v752_v31 = vmul.f32 %v3428_v25, %v3427_v53  ;;  %v994_v25 = vmul.f32 %v3435_v32, %v2277_v27 }
 0x246   : > { %v839_v34 = vadd.f32 %v815_v35, %v722_v45 }
 0x248   : > { %812 = vrot.lane.b32.xlu1 %v765_v36, %s2123_s20 }
 0x24a   : > { %786 = vrot.lane.b32.xlu0 %v752_v31, %s2123_s20  ;;  %919 = vrot.lane.b32.xlu2 %v877_v52, %s2124_s21  ;;  %v791_v8 = vpop.permute.xlu1 %790  ;;  %v995_v31 = vmul.f32 %v3435_v32, %v2288_v33  ;;  %v3436_v52 = vld [vmem:[#allocation18_spill] sm:$0xff]  ;;  %v1115_v32 = vmul.f32 %v2537_v1, %v2301_v39 }
 0x24b   : > { %v818_v62 = vsel %vm814_vm3, %v791_v8, %v2761_v54  ;;  %v870_v22 = vmul.f32 %v3436_v52, %v3433_v16 }
 0x24c   : > { %v2832_v0 = vadd.f32 %v818_v62, %v725_v60  ;;  %v2834_v56 = vpop.permute.xlu0 %1032  ;;  %v2836_v37 = vpop.permute.xlu2 %1149  ;;  %v999_v60 = vmul.f32 %v3434_v30, %v2310_v43  ;;  %v869_v62 = vmul.f32 %v3436_v52, %v3427_v53  ;;  %v1116_v30 = vmul.f32 %v2537_v1, %v2310_v43 }
 0x250   : > { %927 = vrot.lane.b32.xlu1 %v881_v49, %s2124_s21 }
 0x252   : > { %796 = vrot.lane.b32.xlu0 %v757_v50, %s2123_s20  ;;  %929 = vrot.lane.b32.xlu2 %v882_v59, %s2124_s21  ;;  %v2847_v10 = vpop.permute.xlu1 %1034  ;;  %v3437_v59 = vld [vmem:[#allocation20_spill] sm:$0xff] }
 0x253   : > { %v873_v16 = vmul.f32 %v3437_v59, %v2249_v15 }
 0x254   : > { %v2849_v17 = vpop.permute.xlu0 %1042  ;;  %v2851_v28 = vpop.permute.xlu2 %1159 }
 0x258   : > { %788 = vrot.lane.b32.xlu1 %v753_v58, %s2123_s20  ;;  %v874_v58 = vmul.f32 %v3437_v59, %v3431_v2 }
 0x25a   : > { %1044 = vrot.lane.b32.xlu0 %v998_v42, %s2125_s22  ;;  %794 = vrot.lane.b32.xlu2 %v756_v26, %s2123_s20  ;;  %v900_v45 = vpop.permute.xlu1 %899 }
 0x25b   : > { %v932_v19 = vsel %vm931_vm4, %v900_v45, %v2811_v12 }
 0x25c   : > { %v2864_v13 = vadd.f32 %v932_v19, %v839_v34  ;;  %v2866_v35 = vpop.permute.xlu0 %907  ;;  %v2868_v36 = vpop.permute.xlu2 %1024  ;;  %v1112_v19 = vmul.f32 %v2566_v6, %v2288_v33  ;;  %v986_v6 = vmul.f32 %v2617_v57, %v3427_v53  ;;  %v991_v53 = vmul.f32 %v2582_v61, %v3431_v2 }
 0x260   : > { %1036 = vrot.lane.b32.xlu1 %v994_v25, %s2125_s22  ;;  %v990_v25 = vmul.f32 %v2582_v61, %v2249_v15  ;;  %v1229_v15 = vmul.f32 %v2660_v11, %v2288_v33  ;;  %v2948_v33 = vld [vmem:[%s2228_s16 + $0x10] sm:$0xff]  ;;  %v1058_v61 = vsel %vm1048_vm5, %v2781_v21, %v2849_v17 }
 0x261   : > { %v1082_v21 = vadd.f32 %v1058_v61, %v2807_v41 }
 0x262   : > { %905 = vrot.lane.b32.xlu0 %v870_v22, %s2124_s21  ;;  %1038 = vrot.lane.b32.xlu2 %v995_v31, %s2125_s22  ;;  %v2879_v34 = vpop.permute.xlu1 %909 }
 0x264   : > { %v2881_v44 = vpop.permute.xlu0 %1151  ;;  %v2883_v8 = vpop.permute.xlu2 %1268 }
 0x268   : > { %1046 = vrot.lane.b32.xlu1 %v999_v60, %s2125_s22  ;;  %v2927_v60 = vld [vmem:[%s2228_s16 + $0x18] sm:$0xff] }
 0x269   : > { %v987_v1 = vmul.f32 %v2927_v60, %v2617_v57  ;;  %v1228_v57 = vmul.f32 %v2660_v11, %v2277_v27  ;;  %v1172_v11 = vsel %vm1165_vm6, %v2836_v37, %v2881_v44 }
 0x26a   : > { %1153 = vrot.lane.b32.xlu0 %v1111_v4, %s2126_s23  ;;  %903 = vrot.lane.b32.xlu2 %v869_v62, %s2124_s21  ;;  %v1158_v49 = vpop.permute.xlu1 %1157 }
 0x26b   : > { %v1175_v2 = vsel %vm1165_vm6, %v1158_v49, %v2851_v28  ;;  %v1233_v49 = vmul.f32 %v2621_v55, %v2310_v43 }
 0x26c   : > { %v2894_v3 = vpop.permute.xlu0 %1016  ;;  %v2896_v50 = vpop.permute.xlu2 %1133 }
 0x270   : > { %911 = vrot.lane.b32.xlu1 %v873_v16, %s2124_s21  ;;  %v1103_v16 = vmul.f32 %v2948_v33, %v2554_v7 }
 0x272   : > { %1163 = vrot.lane.b32.xlu0 %v1116_v30, %s2126_s23  ;;  %913 = vrot.lane.b32.xlu2 %v874_v58, %s2124_s21  ;;  %v2907_v42 = vpop.permute.xlu1 %1018  ;;  %v1055_v58 = vsel %vm1048_vm5, %v2834_v56, %v2847_v10 }
 0x274   : > { %v2909_v26 = vpop.permute.xlu0 %1026  ;;  %v2911_v45 = vpop.permute.xlu2 %1143 }
 0x278   : > { %1155 = vrot.lane.b32.xlu1 %v1112_v19, %s2126_s23  ;;  %v1079_v19 = vadd.f32 %v1055_v58, %v2779_v9  ;;  %v2996_v58 = vld [vmem:[%s2228_s16 + $0x30] sm:$0xff] }
 0x279   : > { %3439 = vst [vmem:[#allocation5_spill] sm:$0xff] %v2996_v58  ;;  %v1224_v61 = vmul.f32 %v2996_v58, %v2569_v5 }
 0x27a   : > { %1028 = vrot.lane.b32.xlu0 %v990_v25, %s2125_s22  ;;  %1161 = vrot.lane.b32.xlu2 %v1115_v32, %s2126_s23  ;;  %v1267_v31 = vpop.permute.xlu1 %1266  ;;  %v1232_v32 = vmul.f32 %v2621_v55, %v2301_v39  ;;  %v1196_v37 = vadd.f32 %v1172_v11, %v1079_v19  ;;  %v1107_v11 = vmul.f32 %v2996_v58, %v2677_v51 }
 0x27b   : > { %v1289_v25 = vsel %vm1282_vm7, %v1267_v31, %v2883_v8 }
 0x27c   : > { %v1275_v52 = vpop.permute.xlu0 %1274  ;;  %v2922_v22 = vpop.permute.xlu2 %1250  ;;  %v1313_v39 = vadd.f32 %v1289_v25, %v1196_v37  ;;  %v1220_v37 = vmul.f32 %v2948_v33, %v2662_v18 }
 0x280   : > { %1020 = vrot.lane.b32.xlu1 %v986_v6, %s2125_s22 }
 0x282   : > { %1272 = vrot.lane.b32.xlu0 %v1229_v15, %s2127_s28  ;;  %1022 = vrot.lane.b32.xlu2 %v987_v1, %s2125_s22  ;;  %v2936_v62 = vpop.permute.xlu1 %1276  ;;  %v1199_v1 = vadd.f32 %v1175_v2, %v1082_v21  ;;  %v2978_v15 = vld [vmem:[%s2228_s16 + $0x38] sm:$0xff]  ;;  %v935_v2 = vsel %vm931_vm4, %v2866_v35, %v2879_v34 }
 0x283   : > { %v1292_v6 = vsel %vm1282_vm7, %v1275_v52, %v2936_v62  ;;  %3438 = vst [vmem:[#allocation10_spill] sm:$0xff] %v2978_v15  ;;  %v1108_v9 = vmul.f32 %v2978_v15, %v2677_v51  ;;  %v1052_v51 = vsel %vm1048_vm5, %v2868_v36, %v2909_v26  ;;  %v959_v25 = vadd.f32 %v935_v2, %v2832_v0  ;;  %v1368_v0 = vld [vmem:[%s3375_s4 + $0x18] sm:$0xff] }
 0x284   : > { %v2938_v4 = vpop.permute.xlu0 %1135  ;;  %v2940_v59 = vpop.permute.xlu2 %1258  ;;  %v1316_v41 = vadd.f32 %v1292_v6, %v1199_v1 }
 0x285   : > { %v1166_v21 = vsel %vm1165_vm6, %v2896_v50, %v2938_v4  ;;  %v3440_v50 = vld [vmem:[#allocation8_spill] sm:$0xff] }
 0x288   : > { %1030 = vrot.lane.b32.xlu1 %v991_v53, %s2125_s22 }
 0x28a   : > { %1137 = vrot.lane.b32.xlu0 %v1103_v16, %s2126_s23  ;;  %1270 = vrot.lane.b32.xlu2 %v1228_v57, %s2127_s28  ;;  %v1142_v27 = vpop.permute.xlu1 %1141  ;;  %v1104_v16 = vmul.f32 %v2927_v60, %v2554_v7  ;;  %v1049_v7 = vsel %vm1048_vm5, %v2894_v3, %v2907_v42 }
 0x28b   : > { %v1073_v3 = vadd.f32 %v1049_v7, %v2864_v13  ;;  %v1169_v1 = vsel %vm1165_vm6, %v1142_v27, %v2911_v45 }
 0x28c   : > { %v2965_v30 = vpop.permute.xlu0 %1335  ;;  %v688_v56 = vpop.permute.xlu2 %687 }
 0x28d   : > { %v1349_v52 = vadd.f32 %v2965_v30, %v1313_v39  ;;  %v1190_v39 = vadd.f32 %v1166_v21, %v1073_v3  ;;  %v3062_v3 = vld [vmem:[%s3374_s3] sm:$0xff] }
 0x290   : > { %1278 = vrot.lane.b32.xlu1 %v1232_v32, %s2127_s28 }
 0x292   : > { %1147 = vrot.lane.b32.xlu0 %v1108_v9, %s2126_s23  ;;  %1280 = vrot.lane.b32.xlu2 %v1233_v49, %s2127_s28  ;;  %v2985_v31 = vpop.permute.xlu1 %1340  ;;  %v1076_v9 = vadd.f32 %v1052_v51, %v959_v25  ;;  %v1225_v51 = vmul.f32 %v2978_v15, %v2569_v5  ;;  %v3067_v5 = vld [vmem:[%s3374_s3 + $0x8] sm:$0xff] }
 0x293   : > { %v1352_v43 = vadd.f32 %v2985_v31, %v1316_v41 }
 0x294   : > { %v2989_v55 = vpop.permute.xlu0 %1260  ;;  %v2991_v53 = vpop.permute.xlu2 %1325  ;;  %v1193_v27 = vadd.f32 %v1169_v1, %v1076_v9  ;;  %v3443_v1 = vld [vmem:[#allocation9_spill] sm:$0xff] }
 0x295   : > { %v1358_v57 = vpack.c.bf16 %v1352_v43, %v1349_v52  ;;  %v1286_v13 = vsel %vm1282_vm7, %v2940_v59, %v2989_v55 }
 0x296   : > { %v1310_v52 = vadd.f32 %v1286_v13, %v1193_v27 }
 0x297   : > { %1412 = vmatpush.bf16.msra.mxu0 %v1358_v57  ;;  %1969 = vmatpush.bf16.msra.mxu2 %v1358_v57 }
 0x298   : > { %1139 = vrot.lane.b32.xlu1 %v1104_v16, %s2126_s23  ;;  %v3441_v16 = vld [vmem:[#allocation6_spill] sm:$0xff] }
 0x29a   : > { %1262 = vrot.lane.b32.xlu0 %v1224_v61, %s2127_s28  ;;  %1145 = vrot.lane.b32.xlu2 %v1107_v11, %s2126_s23  ;;  %v3011_v19 = vpop.permute.xlu1 %1252  ;;  %v3442_v61 = vld [vmem:[#allocation7_spill] sm:$0xff]  ;;  %s2128_s23 = smov 19  }
 0x29b   : > { %v1283_v36 = vsel %vm1282_vm7, %v2922_v22, %v3011_v19 }
 0x29c   : > { %v694_v32 = vpop.permute.xlu0 %693  ;;  %v805_v35 = vpop.permute.xlu2 %804  ;;  %v1307_v41 = vadd.f32 %v1283_v36, %v1190_v39  ;;  %v1365_v39 = vld [vmem:[%s3375_s4] sm:$0xff] }
 0x29d   : > { %v708_v6 = vsel %vm697_vm2, %v2691_v40, %v694_v32  ;;  %v1221_v40 = vmul.f32 %v2927_v60, %v2662_v18 }
 0x29e   : > { %v732_v49 = vadd.f32 %v708_v6, %v3440_v50  ;;  %v1343_v59 = vadd.f32 %v2991_v53, %v1307_v41 }
 0x2a0   : > { %1254 = vrot.lane.b32.xlu1 %v1220_v37, %s2127_s28 }
 0x2a2   : > { %1386 = vperm.xlu0 %2044, %v1368_v0   ;;  %1256 = vrot.lane.b32.xlu2 %v1221_v40, %s2127_s28  ;;  %v686_v22 = vpop.permute.xlu1 %685  ;;  %v1366_v40 = vld [vmem:[%s3375_s4 + $0x8] sm:$0xff] }
 0x2a3   : > { %v705_v43 = vsel %vm697_vm2, %v2679_v63, %v686_v22  ;;  %v706_v57 = vsel %vm697_vm2, %v686_v22, %v688_v56  ;;  %v1581_v63 = vld [vmem:[%s3377_s6] sm:$0xff]  ;;  %v1367_v56 = vld [vmem:[%s3375_s4 + $0x10] sm:$0xff] }
 0x2a4   : > { %v729_v18 = vadd.f32 %v705_v43, %v3441_v16  ;;  %v730_v11 = vadd.f32 %v706_v57, %v3442_v61  ;;  %v3046_v2 = vpop.permute.xlu0 %1330  ;;  %v920_v21 = vpop.permute.xlu2 %919  ;;  %v1582_v16 = vld [vmem:[%s3377_s6 + $0x8] sm:$0xff] }
 0x2a5   : > { %v1346_v7 = vadd.f32 %v3046_v2, %v1310_v52  ;;  %v939_v43 = vsel %vm931_vm4, %v2723_v29, %v920_v21 }
 0x2a7   : > { %v1355_v25 = vpack.c.bf16 %v1346_v7, %v1343_v59 }
 0x2a8   : > { %1264 = vrot.lane.b32.xlu1 %v1225_v51, %s2127_s28 }
 0x2a9   : > { %1413 = vmatpush.bf16.msra.mxu0 %v1355_v25  ;;  %1970 = vmatpush.bf16.msra.mxu2 %v1355_v25 }
 0x2aa   : > { %1587 = vperm.xlu0 %2044, %v1581_v63   ;;  %1381 = vperm.xlu2 %2046, %v1367_v56   ;;  %v696_v6 = vpop.permute.xlu1 %695 }
 0x2ab   : > { %v709_v37 = vsel %vm697_vm2, %v694_v32, %v696_v6  ;;  %v1584_v32 = vld [vmem:[%s3377_s6 + $0x18] sm:$0xff] }
 0x2ac   : > { %v733_v36 = vadd.f32 %v709_v37, %v3443_v1  ;;  %v811_v50 = vpop.permute.xlu0 %810  ;;  %1942 = vmatmul.msk.bf16.vlgmr.msra.gmra.mxu0 %vm1399_vm8, %v3062_v3  ;;  %1943 = vmatmul.msk.bf16.vlgmr.msra.gmra.mxu2 %vm1399_vm8, %v3067_v5  ;;  %v930_v13 = vpop.permute.xlu2 %929 }
 0x2ad   : > { %v825_v9 = vsel %vm814_vm3, %v2757_v38, %v811_v50 }
 0x2ae   : > { %v3080_v0 = vadd.f32 %v825_v9, %v732_v49 }
 0x2b0   : > { %1371 = vperm.xlu1 %2045, %v1365_v39  }
 0x2b2   : > { %1602 = vperm.xlu0 %2044, %v1584_v32   ;;  %1376 = vperm.xlu2 %2046, %v1366_v40   ;;  %v803_v27 = vpop.permute.xlu1 %802 }
 0x2b3   : > { %v822_v38 = vsel %vm814_vm3, %v2725_v47, %v803_v27  ;;  %v823_v41 = vsel %vm814_vm3, %v803_v27, %v805_v35  ;;  %v1583_v47 = vld [vmem:[%s3377_s6 + $0x10] sm:$0xff] }
 0x2b4   : > { %v846_v49 = vadd.f32 %v822_v38, %v729_v18  ;;  %v847_v22 = vadd.f32 %v823_v41, %v730_v11  ;;  %v922_v52 = vpop.permute.xlu0 %921  ;;  %v3100_v35 = vpop.permute.xlu2 %794  ;;  %v3444_v11 = vld [vmem:[#allocation11_spill] sm:$0xff] }
 0x2b5   : > { %v940_v57 = vsel %vm931_vm4, %v920_v21, %v922_v52  ;;  %v699_v29 = vsel %vm697_vm2, %v2491_v23, %v3444_v11  ;;  %v3445_v23 = vld [vmem:[#allocation12_spill] sm:$0xff] }
 0x2b6   : > { %v964_v61 = vadd.f32 %v940_v57, %v847_v22  ;;  %v963_v59 = vadd.f32 %v939_v43, %v846_v49  ;;  %v723_v25 = vadd.f32 %v699_v29, %v2611_v14  ;;  %v3446_v14 = vld [vmem:[#allocation21_spill] sm:$0xff] }
 0x2b8   : > { %1592 = vperm.xlu1 %2045, %v1582_v16  }
 0x2ba   : > { %1597 = vperm.xlu2 %2046, %v1583_v47   ;;  %v813_v18 = vpop.permute.xlu1 %812 }
 0x2bb   : > { %v826_v7 = vsel %vm814_vm3, %v811_v50, %v813_v18 }
 0x2bc   : > { %v850_v51 = vadd.f32 %v826_v7, %v733_v36  ;;  %v787_v21 = vpop.permute.xlu0 %786  ;;  %v1039_v37 = vpop.permute.xlu2 %1038  ;;  %v700_v36 = vsel %vm697_vm2, %v3444_v11, %v3445_v23 }
 0x2bd   : > { %v816_v63 = vsel %vm814_vm3, %v2809_v24, %v787_v21  ;;  %v724_v32 = vadd.f32 %v700_v36, %v3446_v14 }
 0x2be   : > { %v3109_v56 = vadd.f32 %v816_v63, %v723_v25 }
 0x2c2   : > { %v928_v6 = vpop.permute.xlu1 %927 }
 0x2c3   : > { %v942_v63 = vsel %vm931_vm4, %v2800_v20, %v928_v6 }
 0x2c4   : > { %v797_v1 = vpop.permute.xlu0 %796  ;;  %v3123_v38 = vpop.permute.xlu2 %903  ;;  %v966_v20 = vadd.f32 %v942_v63, %v3080_v0 }
 0x2c5   : > { %v820_v9 = vsel %vm814_vm3, %v3100_v35, %v797_v1  ;;  %v943_v1 = vsel %vm931_vm4, %v928_v6, %v930_v13 }
 0x2c6   : > { %v3114_v39 = vadd.f32 %v820_v9, %v2656_v48  ;;  %v967_v13 = vadd.f32 %v943_v1, %v850_v51 }
 0x2ca   : > { %v789_v50 = vpop.permute.xlu1 %788 }
 0x2cb   : > { %v817_v24 = vsel %vm814_vm3, %v787_v21, %v789_v50 }
 0x2cc   : > { %v3121_v40 = vadd.f32 %v817_v24, %v724_v32  ;;  %v1045_v27 = vpop.permute.xlu0 %1044  ;;  %v3127_v22 = vpop.permute.xlu2 %913 }
 0x2cd   : > { %v1059_v50 = vsel %vm1048_vm5, %v2849_v17, %v1045_v27 }
 0x2d2   : > { %v1037_v41 = vpop.permute.xlu1 %1036 }
 0x2d3   : > { %v1056_v9 = vsel %vm1048_vm5, %v2847_v10, %v1037_v41  ;;  %v1057_v23 = vsel %vm1048_vm5, %v1037_v41, %v1039_v37  ;;  %v1083_v41 = vadd.f32 %v1059_v50, %v966_v20 }
 0x2d4   : > { %v3125_v49 = vpop.permute.xlu0 %905  ;;  %v1162_v43 = vpop.permute.xlu2 %1161  ;;  %v1080_v6 = vadd.f32 %v1056_v9, %v963_v59  ;;  %v1081_v58 = vadd.f32 %v1057_v23, %v964_v61 }
 0x2d5   : > { %v1176_v10 = vsel %vm1165_vm6, %v2851_v28, %v1162_v43 }
 0x2da   : > { %v1047_v48 = vpop.permute.xlu1 %1046 }
 0x2db   : > { %v1060_v14 = vsel %vm1048_vm5, %v1045_v27, %v1047_v48 }
 0x2dc   : > { %v1154_v52 = vpop.permute.xlu0 %1153  ;;  %v3131_v18 = vpop.permute.xlu2 %1022  ;;  %v1084_v48 = vadd.f32 %v1060_v14, %v967_v13 }
 0x2dd   : > { %v1173_v32 = vsel %vm1165_vm6, %v2881_v44, %v1154_v52 }
 0x2de   : > { %v1197_v44 = vadd.f32 %v1173_v32, %v1080_v6 }
 0x2e2   : > { %v3129_v57 = vpop.permute.xlu1 %911 }
 0x2e4   : > { %v1164_v16 = vpop.permute.xlu0 %1163  ;;  %v1271_v21 = vpop.permute.xlu2 %1270 }
 0x2e5   : > { %v1177_v37 = vsel %vm1165_vm6, %v1162_v43, %v1164_v16  ;;  %v1290_v17 = vsel %vm1282_vm7, %v2883_v8, %v1271_v21 }
 0x2e6   : > { %v1201_v0 = vadd.f32 %v1177_v37, %v1084_v48  ;;  %v1314_v51 = vadd.f32 %v1290_v17, %v1197_v44 }
 0x2ea   : > { %v1156_v47 = vpop.permute.xlu1 %1155 }
 0x2eb   : > { %v1174_v24 = vsel %vm1165_vm6, %v1154_v52, %v1156_v47  ;;  %v1200_v47 = vadd.f32 %v1176_v10, %v1083_v41  ;;  %v934_v10 = vsel %vm931_vm4, %v3123_v38, %v3125_v49 }
 0x2ec   : > { %v3133_v11 = vpop.permute.xlu0 %1028  ;;  %v1198_v15 = vadd.f32 %v1174_v24, %v1081_v58  ;;  %v1281_v52 = vpop.permute.xlu2 %1280 }
 0x2f2   : > { %v3135_v29 = vpop.permute.xlu1 %1020 }
 0x2f4   : > { %v1273_v7 = vpop.permute.xlu0 %1272  ;;  %v1146_v14 = vpop.permute.xlu2 %1145 }
 0x2f5   : > { %v1291_v27 = vsel %vm1282_vm7, %v1271_v21, %v1273_v7  ;;  %v1350_v7 = vadd.f32 %v2965_v30, %v1314_v51 }
 0x2f6   : > { %v1315_v59 = vadd.f32 %v1291_v27, %v1198_v15  ;;  %v819_v15 = vsel %vm814_vm3, %v2761_v54, %v3100_v35  ;;  %v1053_v54 = vsel %vm1048_vm5, %v2909_v26, %v3133_v11 }
 0x2f7   : > { %v843_v50 = vadd.f32 %v819_v15, %v2654_v46  ;;  %v1170_v46 = vsel %vm1165_vm6, %v2911_v45, %v1146_v14  ;;  %v937_v45 = vsel %vm931_vm4, %v3129_v57, %v3127_v22 }
 0x2f8   : > { %v1351_v58 = vadd.f32 %v2965_v30, %v1315_v59  ;;  %v933_v30 = vsel %vm931_vm4, %v2811_v12, %v3123_v38  ;;  %v961_v41 = vadd.f32 %v937_v45, %v3114_v39 }
 0x2f9   : > { %v957_v24 = vadd.f32 %v933_v30, %v3109_v56  ;;  %v958_v56 = vadd.f32 %v934_v10, %v3121_v40 }
 0x2fa   : > { %v3137_v25 = vpop.permute.xlu1 %1030 }
 0x2fb   : > { %v1054_v38 = vsel %vm1048_vm5, %v3133_v11, %v3137_v25 }
 0x2fc   : > { %v3145_v36 = vpop.permute.xlu0 %1137 }
 0x2fd   : > { %v1167_v12 = vsel %vm1165_vm6, %v2938_v4, %v3145_v36  ;;  %v1051_v4 = vsel %vm1048_vm5, %v3135_v29, %v3131_v18 }
 0x2fe   : > { %v1075_v22 = vadd.f32 %v1051_v4, %v958_v56 }
 0x302   : > { %v1279_v61 = vpop.permute.xlu1 %1278 }
 0x303   : > { %v1293_v28 = vsel %vm1282_vm7, %v2936_v62, %v1279_v61  ;;  %v1294_v43 = vsel %vm1282_vm7, %v1279_v61, %v1281_v52  ;;  %v936_v62 = vsel %vm931_vm4, %v2879_v34, %v3129_v57  ;;  %v1050_v34 = vsel %vm1048_vm5, %v2907_v42, %v3135_v29  ;;  %v1257_v57 = vpop.permute.xlu2 %1256 }
 0x304   : > { %v1317_v16 = vadd.f32 %v1293_v28, %v1200_v47  ;;  %v1318_v63 = vadd.f32 %v1294_v43, %v1201_v0  ;;  %v1148_v8 = vpop.permute.xlu0 %1147  ;;  %v1074_v13 = vadd.f32 %v1050_v34, %v957_v24  ;;  %v1078_v29 = vadd.f32 %v1054_v38, %v961_v41 }
 0x306   : > { %v1353_v21 = vadd.f32 %v2985_v31, %v1317_v16  ;;  %v1354_v1 = vadd.f32 %v2985_v31, %v1318_v63  ;;  %v960_v31 = vadd.f32 %v936_v62, %v843_v50  ;;  %v1191_v42 = vadd.f32 %v1167_v12, %v1074_v13 }
 0x308   : > { %v1359_v9 = vpack.c.bf16 %v1353_v21, %v1350_v7  ;;  %v1360_v23 = vpack.c.bf16 %v1354_v1, %v1351_v58  ;;  %v1077_v20 = vadd.f32 %v1053_v54, %v960_v31 }
 0x30a   : > { %v1140_v32 = vpop.permute.xlu1 %1139  ;;  %1431 = vmatpush.bf16.msra.mxu1 %v1359_v9  ;;  %1971 = vmatpush.bf16.msra.mxu3 %v1359_v9  ;;  %v1194_v6 = vadd.f32 %v1170_v46, %v1077_v20 }
 0x30b   : > { %1450 = vmatpush.bf16.msrb.mxu2 %v1360_v23  ;;  %v1168_v49 = vsel %vm1165_vm6, %v3145_v36, %v1140_v32  ;;  %v3222_v61 = vpop.permute.xlu2 %1381 }
 0x30c   : > { %v1263_v35 = vpop.permute.xlu0 %1262  ;;  %v1192_v44 = vadd.f32 %v1168_v49, %v1075_v22 }
 0x30d   : > { %v1287_v26 = vsel %vm1282_vm7, %v2989_v55, %v1263_v35 }
 0x30e   : > { %v1311_v37 = vadd.f32 %v1287_v26, %v1194_v6 }
 0x310   : > { %v1347_v18 = vadd.f32 %v3046_v2, %v1311_v37 }
 0x312   : > { %v1255_v17 = vpop.permute.xlu1 %1254 }
 0x313   : > { %v1284_v55 = vsel %vm1282_vm7, %v3011_v19, %v1255_v17  ;;  %v1171_v19 = vsel %vm1165_vm6, %v1146_v14, %v1148_v8  ;;  %v1285_v40 = vsel %vm1282_vm7, %v1255_v17, %v1257_v57  ;;  %v3228_v21 = vpop.permute.xlu2 %1376 }
 0x314   : > { %v1308_v27 = vadd.f32 %v1284_v55, %v1191_v42  ;;  %v1195_v47 = vadd.f32 %v1171_v19, %v1078_v29  ;;  %v1309_v11 = vadd.f32 %v1285_v40, %v1192_v44  ;;  %v3233_v62 = vpop.permute.xlu0 %1386  ;;  %v3239_v40 = vld [vmem:[%s3376_s5] sm:$0xff]  ;;  %v3246_v29 = vld [vmem:[%s3376_s5 + $0x8] sm:$0xff] }
 0x316   : > { %v1344_v48 = vadd.f32 %v2991_v53, %v1308_v27  ;;  %v1345_v0 = vadd.f32 %v2991_v53, %v1309_v11 }
 0x318   : > { %v1356_v52 = vpack.c.bf16 %v1347_v18, %v1344_v48 }
 0x31a   : > { %v1265_v25 = vpop.permute.xlu1 %1264  ;;  %1432 = vmatpush.bf16.msra.mxu1 %v1356_v52  ;;  %1972 = vmatpush.bf16.msra.mxu3 %v1356_v52 }
 0x31b   : > { %v1288_v39 = vsel %vm1282_vm7, %v1263_v35, %v1265_v25 }
 0x31c   : > { %v1312_v36 = vadd.f32 %v1288_v39, %v1195_v47 }
 0x31d   : > { %1944 = vmatmul.msk.bf16.vlgmr.msra.gmra.mxu1 %vm1399_vm8, %v3062_v3  ;;  %1945 = vmatmul.msk.bf16.vlgmr.msra.gmra.mxu3 %vm1399_vm8, %v3067_v5 }
 0x31e   : > { %v1348_v51 = vadd.f32 %v3046_v2, %v1312_v36 }
 0x320   : > { %v1357_v59 = vpack.c.bf16 %v1348_v51, %v1345_v0 }
 0x322   : > { %1451 = vmatpush.bf16.msrb.mxu2 %v1357_v59  ;;  %v3224_v43 = vpop.permute.xlu1 %1371 }
 0x325   : > { %1946 = vmatmul.msk.bf16.vlgmr.msrb.gmra.mxu2 %vm1399_vm8, %v3062_v3 }
 0x329   : > { %v1415_v28 = vpop.f32.mrf.mxu0 }
 0x32a   : > { %v1416_v16 = vadd.f32 %v1415_v28, %v3224_v43 }
 0x32c   : > { %v1475_v63 = vmul.f32 %v1416_v16, %v1416_v16  ;;  %v1463_v57 = vmul.f32 0.5, %v1416_v16 }
 0x32e   : > { %v1487_v1 = vmul.f32 %v1475_v63, %v1416_v16 }
 0x32f   : > { %v1420_v8 = vpop.f32.mrf.mxu2 }
 0x330   : > { %v1421_v7 = vadd.f32 %v1420_v8, %v3222_v61  ;;  %v1499_v50 = vmul.f32 0.044715, %v1487_v1 }
 0x331   : > { %v1417_v53 = vpop.f32.mrf.mxu0 }
 0x332   : > { %v1481_v2 = vmul.f32 %v1421_v7, %v1421_v7  ;;  %v1418_v58 = vadd.f32 %v1417_v53, %v3228_v21  ;;  %v1511_v34 = vadd.f32 %v1499_v50, %v1416_v16  ;;  %v1469_v45 = vmul.f32 0.5, %v1421_v7 }
 0x334   : > { %v1493_v15 = vmul.f32 %v1481_v2, %v1421_v7  ;;  %v1478_v3 = vmul.f32 %v1418_v58, %v1418_v58  ;;  %v1523_v26 = vmul.f32 0.7978846, %v1511_v34  ;;  %v1466_v49 = vmul.f32 0.5, %v1418_v58 }
 0x335   : > { %1947 = vmatmul.msk.bf16.gmra.mxu2 %vm1399_vm8, %v3067_v5 }
 0x336   : > { %v1505_v9 = vmul.f32 0.044715, %v1493_v15  ;;  %v1490_v23 = vmul.f32 %v1478_v3, %v1418_v58 }
 0x337   : > { %v1422_v14 = vpop.f32.mrf.mxu2 }
 0x338   : > { %v1502_v32 = vmul.f32 0.044715, %v1490_v23  ;;  %v1423_v30 = vadd.f32 %v1422_v14, %v3233_v62  ;;  %v1517_v54 = vadd.f32 %v1505_v9, %v1421_v7 }
 0x33a   : > { %v1484_v31 = vmul.f32 %v1423_v30, %v1423_v30  ;;  %v1514_v35 = vadd.f32 %v1502_v32, %v1418_v58  ;;  %v1529_v24 = vmul.f32 0.7978846, %v1517_v54  ;;  %v1472_v4 = vmul.f32 0.5, %v1423_v30 }
 0x33c   : > { %v1496_v46 = vmul.f32 %v1484_v31, %v1423_v30  ;;  %v1526_v12 = vmul.f32 0.7978846, %v1514_v35  ;;  %2047 = vtanh.f32 %v1529_v24 }
 0x33e   : > { %v1508_v20 = vmul.f32 0.044715, %v1496_v46  ;;  %2049 = vtanh.f32 %v1526_v12 }
 0x33f   : > { %2051 = vtanh.f32 %v1523_v26 }
 0x340   : > { %v1520_v13 = vadd.f32 %v1508_v20, %v1423_v30 }
 0x342   : > { %v1532_v5 = vmul.f32 0.7978846, %v1520_v13  ;;  %v2048_v6 = vpop.eup %2047 }
 0x343   : > { %v1553_v37 = vadd.f32 1.0, %v2048_v6 }
 0x344   : > { %2053 = vtanh.f32 %v1532_v5  ;;  %v2050_v10 = vpop.eup %2049 }
 0x345   : > { %v2052_v42 = vpop.eup %2051  ;;  %v1550_v56 = vadd.f32 1.0, %v2050_v10  ;;  %v1565_v27 = vmul.f32 %v1553_v37, %v1469_v45 }
 0x346   : > { %v1547_v41 = vadd.f32 1.0, %v2052_v42 }
 0x347   : > { %v1562_v48 = vmul.f32 %v1550_v56, %v1466_v49 }
 0x348   : > { %v1559_v18 = vmul.f32 %v1547_v41, %v1463_v57 }
 0x34a   : > { %v2054_v17 = vpop.eup %2053  ;;  %v1575_v19 = vpack.c.bf16 %v1562_v48, %v1559_v18 }
 0x34b   : > { %v1556_v55 = vadd.f32 1.0, %v2054_v17 }
 0x34d   : > { %v1568_v38 = vmul.f32 %v1556_v55, %v1472_v4 }
 0x34f   : > { %v1578_v22 = vpack.c.bf16 %v1568_v38, %v1565_v27 }
 0x351   : > { %1627 = vmatpush.bf16.msrb.mxu3 %v1578_v22 }
 0x355   : > { %1628 = vmatpush.bf16.msrb.mxu3 %v1575_v19 }
 0x358   : > { %1956 = vmatmul.msk.bf16.vlgmr.msrb.gmra.mxu3 %vm1399_vm8, %v3239_v40 }
 0x368   : > { %1957 = vmatmul.msk.bf16.gmra.mxu3 %vm1399_vm8, %v3246_v29 }
 0x39a   : > { %v1434_v44 = vpop.f32.mrf.mxu1 }
 0x39b   : > { %v1435_v52 = vadd.f32 %v1434_v44, %v3224_v43 }
 0x39d   : > { %v1476_v47 = vmul.f32 %v1435_v52, %v1435_v52  ;;  %v1464_v19 = vmul.f32 0.5, %v1435_v52 }
 0x39f   : > { %v1488_v51 = vmul.f32 %v1476_v47, %v1435_v52 }
 0x3a0   : > { %v1439_v11 = vpop.f32.mrf.mxu3 }
 0x3a1   : > { %v1440_v25 = vadd.f32 %v1439_v11, %v3222_v61  ;;  %v1500_v8 = vmul.f32 0.044715, %v1488_v51 }
 0x3a2   : > { %v1436_v39 = vpop.f32.mrf.mxu1 }
 0x3a3   : > { %v1482_v36 = vmul.f32 %v1440_v25, %v1440_v25  ;;  %v1437_v0 = vadd.f32 %v1436_v39, %v3228_v21  ;;  %v1512_v3 = vadd.f32 %v1500_v8, %v1435_v52  ;;  %v1470_v37 = vmul.f32 0.5, %v1440_v25 }
 0x3a5   : > { %v1494_v59 = vmul.f32 %v1482_v36, %v1440_v25  ;;  %v1479_v28 = vmul.f32 %v1437_v0, %v1437_v0  ;;  %v1524_v54 = vmul.f32 0.7978846, %v1512_v3  ;;  %v1467_v49 = vmul.f32 0.5, %v1437_v0 }
 0x3a7   : > { %v1506_v16 = vmul.f32 0.044715, %v1494_v59  ;;  %v1491_v63 = vmul.f32 %v1479_v28, %v1437_v0 }
 0x3a8   : > { %v1441_v7 = vpop.f32.mrf.mxu3  ;;  %v1453_v53 = vpop.f32.mrf.mxu2 }
 0x3a9   : > { %v1503_v2 = vmul.f32 0.044715, %v1491_v63  ;;  %v1442_v58 = vadd.f32 %v1441_v7, %v3233_v62  ;;  %v1518_v1 = vadd.f32 %v1506_v16, %v1440_v25  ;;  %v3258_v46 = vadd.f32 %v1453_v53, %v3224_v43 }
 0x3ab   : > { %v1485_v15 = vmul.f32 %v1442_v58, %v1442_v58  ;;  %v1515_v9 = vadd.f32 %v1503_v2, %v1437_v0  ;;  %v1530_v50 = vmul.f32 0.7978846, %v1518_v1  ;;  %v1477_v12 = vmul.f32 %v3258_v46, %v3258_v46 }
 0x3ac   : > { %v1473_v45 = vmul.f32 0.5, %v1442_v58 }
 0x3ad   : > { %v1497_v23 = vmul.f32 %v1485_v15, %v1442_v58  ;;  %v1527_v32 = vmul.f32 0.7978846, %v1515_v9  ;;  %2055 = vtanh.f32 %v1530_v50  ;;  %v1489_v17 = vmul.f32 %v1477_v12, %v3258_v46 }
 0x3af   : > { %v1509_v14 = vmul.f32 0.044715, %v1497_v23  ;;  %2057 = vtanh.f32 %v1527_v32 }
 0x3b0   : > { %v1455_v30 = vpop.f32.mrf.mxu2  ;;  %2059 = vtanh.f32 %v1524_v54 }
 0x3b1   : > { %v1521_v31 = vadd.f32 %v1509_v14, %v1442_v58  ;;  %v3255_v35 = vadd.f32 %v1455_v30, %v3228_v21 }
 0x3b3   : > { %v1533_v34 = vmul.f32 0.7978846, %v1521_v31  ;;  %v2056_v24 = vpop.eup %2055  ;;  %v1480_v20 = vmul.f32 %v3255_v35, %v3255_v35  ;;  %v1468_v32 = vmul.f32 0.5, %v3255_v35  ;;  %v1465_v31 = vmul.f32 0.5, %v3258_v46 }
 0x3b4   : > { %v1554_v6 = vadd.f32 1.0, %v2056_v24 }
 0x3b5   : > { %2061 = vtanh.f32 %v1533_v34  ;;  %v2058_v13 = vpop.eup %2057  ;;  %v1492_v42 = vmul.f32 %v1480_v20, %v3255_v35  ;;  %v1588_v20 = vpop.permute.xlu0 %1587 }
 0x3b6   : > { %v2060_v21 = vpop.eup %2059  ;;  %v1551_v55 = vadd.f32 1.0, %v2058_v13  ;;  %v1566_v27 = vmul.f32 %v1554_v6, %v1470_v37 }
 0x3b7   : > { %v1548_v41 = vadd.f32 1.0, %v2060_v21  ;;  %v1504_v22 = vmul.f32 0.044715, %v1492_v42  ;;  %v1598_v21 = vpop.permute.xlu2 %1597 }
 0x3b8   : > { %v1458_v26 = vpop.f32.mrf.mxu2  ;;  %v1563_v44 = vmul.f32 %v1551_v55, %v1467_v49 }
 0x3b9   : > { %v1459_v5 = vadd.f32 %v1458_v26, %v3222_v61  ;;  %v1501_v61 = vmul.f32 0.044715, %v1489_v17  ;;  %v1560_v25 = vmul.f32 %v1548_v41, %v1464_v19  ;;  %v1516_v36 = vadd.f32 %v1504_v22, %v3255_v35  ;;  %v1593_v35 = vpop.permute.xlu1 %1592 }
 0x3bb   : > { %v2062_v10 = vpop.eup %2061  ;;  %v1483_v43 = vmul.f32 %v1459_v5, %v1459_v5  ;;  %v1576_v51 = vpack.c.bf16 %v1563_v44, %v1560_v25  ;;  %v1513_v59 = vadd.f32 %v1501_v61, %v3258_v46  ;;  %v1528_v63 = vmul.f32 0.7978846, %v1516_v36 }
 0x3bc   : > { %v1557_v4 = vadd.f32 1.0, %v2062_v10  ;;  %v1471_v15 = vmul.f32 0.5, %v1459_v5 }
 0x3bd   : > { %v1495_v56 = vmul.f32 %v1483_v43, %v1459_v5  ;;  %v1525_v8 = vmul.f32 0.7978846, %v1513_v59  ;;  %v1603_v42 = vpop.permute.xlu0 %1602 }
 0x3be   : > { %v1569_v38 = vmul.f32 %v1557_v4, %v1473_v45 }
 0x3bf   : > { %v1507_v57 = vmul.f32 0.044715, %v1495_v56  ;;  %v2075_v56 = vld [vmem:[%s2228_s16] sm:$0xff] }
 0x3c0   : > { %v1460_v48 = vpop.f32.mrf.mxu2  ;;  %v1579_v18 = vpack.c.bf16 %v1569_v38, %v1566_v27 }
 0x3c1   : > { %v1461_v47 = vadd.f32 %v1460_v48, %v3233_v62  ;;  %v1519_v11 = vadd.f32 %v1507_v57, %v1459_v5 }
 0x3c2   : > { %1646 = vmatpush.bf16.msrb.mxu0 %v1579_v18 }
 0x3c3   : > { %v1486_v39 = vmul.f32 %v1461_v47, %v1461_v47  ;;  %v1531_v28 = vmul.f32 0.7978846, %v1519_v11  ;;  %v1474_v3 = vmul.f32 0.5, %v1461_v47 }
 0x3c5   : > { %v1498_v0 = vmul.f32 %v1486_v39, %v1461_v47  ;;  %2063 = vtanh.f32 %v1531_v28  ;;  %v2076_v39 = vld [vmem:[%s2228_s16 + $0x8] sm:$0xff]  ;;  %v2077_v28 = vld [vmem:[%s2228_s16 + $0x20] sm:$0xff] }
 0x3c6   : > { %1647 = vmatpush.bf16.msrb.mxu0 %v1576_v51  ;;  %2065 = vtanh.f32 %v1528_v63  ;;  %v2078_v63 = vld [vmem:[%s2228_s16 + $0x28] sm:$0xff] }
 0x3c7   : > { %v1510_v16 = vmul.f32 0.044715, %v1498_v0  ;;  %2067 = vtanh.f32 %v1525_v8 }
 0x3c9   : > { %1958 = vmatmul.msk.bf16.vlgmr.msrb.gmra.mxu0 %vm1399_vm8, %v3239_v40  ;;  %v1522_v52 = vadd.f32 %v1510_v16, %v1461_v47 }
 0x3cb   : > { %v1534_v62 = vmul.f32 0.7978846, %v1522_v52  ;;  %v2064_v7 = vpop.eup %2063 }
 0x3cc   : > { %v2066_v53 = vpop.eup %2065  ;;  %v1555_v58 = vadd.f32 1.0, %v2064_v7 }
 0x3cd   : > { %2069 = vtanh.f32 %v1534_v62  ;;  %v2068_v2 = vpop.eup %2067  ;;  %v1552_v23 = vadd.f32 1.0, %v2066_v53  ;;  %v2079_v53 = vld [vmem:[%s2228_s16 + $0x40] sm:$0xff] }
 0x3ce   : > { %v1567_v50 = vmul.f32 %v1555_v58, %v1471_v15  ;;  %v1549_v30 = vadd.f32 1.0, %v2068_v2  ;;  %v2080_v58 = vld [vmem:[%s2228_s16 + $0x48] sm:$0xff] }
 0x3cf   : > { %v1564_v34 = vmul.f32 %v1552_v23, %v1468_v32 }
 0x3d0   : > { %v1561_v24 = vmul.f32 %v1549_v30, %v1465_v31  ;;  %v3447_v31 = vld [vmem:[#allocation10_spill] sm:$0xff] }
 0x3d2   : > { %v1577_v13 = vpack.c.bf16 %v1564_v34, %v1561_v24  ;;  %v3448_v24 = vld [vmem:[#allocation5_spill] sm:$0xff] }
 0x3d3   : > { %v2070_v1 = vpop.eup %2069 }
 0x3d4   : > { %v1558_v9 = vadd.f32 1.0, %v2070_v1 }
 0x3d6   : > { %v1570_v14 = vmul.f32 %v1558_v9, %v1474_v3  ;;  %v2081_v3 = vld [vmem:[%s2228_s16 + $0x60] sm:$0xff] }
 0x3d8   : > { %v1580_v54 = vpack.c.bf16 %v1570_v14, %v1567_v50 }
 0x3d9   : > { %1959 = vmatmul.msk.bf16.gmra.mxu0 %vm1399_vm8, %v3246_v29 }
 0x3da   : > { %1665 = vmatpush.bf16.msrb.mxu1 %v1580_v54 }
 0x3db   : > { %v1630_v12 = vpop.f32.mrf.mxu3 }
 0x3dc   : > { %v1631_v26 = vadd.f32 %v1630_v12, %v1588_v20  ;;  %v2082_v12 = vld [vmem:[%s2228_s16 + $0x58] sm:$0xff] }
 0x3de   : > { %1690 = vrot.lane.b32.xlu1 %v1631_v26, %s2128_s23  ;;  %1666 = vmatpush.bf16.msrb.mxu1 %v1577_v13  ;;  %v2083_v13 = vld [vmem:[%s2228_s16 + $0x50] sm:$0xff] }
 0x3e1   : > { %1960 = vmatmul.msk.bf16.vlgmr.msrb.gmra.mxu1 %vm1399_vm8, %v3239_v40 }
 0x3e3   : > { %v1632_v5 = vpop.f32.mrf.mxu3 }
 0x3e4   : > { %v1633_v46 = vadd.f32 %v1632_v5, %v1593_v35 }
 0x3e6   : > { %1696 = vrot.lane.b32.xlu1 %v1633_v46, %s2128_s23 }
 0x3eb   : > { %v1635_v6 = vpop.f32.mrf.mxu3 }
 0x3ec   : > { %v1636_v10 = vadd.f32 %v1635_v6, %v1598_v21 }
 0x3ee   : > { %1702 = vrot.lane.b32.xlu1 %v1636_v10, %s2128_s23  ;;  %v2084_v10 = vld [vmem:[%s2228_s16 + $0x78] sm:$0xff] }
 0x3f1   : > { %1961 = vmatmul.msk.bf16.gmra.mxu1 %vm1399_vm8, %v3246_v29 }
 0x3f3   : > { %v1637_v43 = vpop.f32.mrf.mxu3 }
 0x3f4   : > { %v1638_v37 = vadd.f32 %v1637_v43, %v1603_v42  ;;  %v2085_v43 = vld [vmem:[%s2228_s16 + $0x68] sm:$0xff] }
 0x3f6   : > { %1708 = vrot.lane.b32.xlu1 %v1638_v37, %s2128_s23 }
 0x446   : > { %v1649_v40 = vpop.f32.mrf.mxu0 }
 0x447   : > { %v1650_v17 = vadd.f32 %v1649_v40, %v1588_v20  ;;  %v2086_v40 = vld [vmem:[%s2228_s16 + $0x70] sm:$0xff] }
 0x449   : > { %1692 = vrot.lane.b32.xlu2 %v1650_v17, %s2128_s23 }
 0x44e   : > { %v1651_v45 = vpop.f32.mrf.mxu0 }
 0x44f   : > { %v1652_v4 = vadd.f32 %v1651_v45, %v1593_v35 }
 0x450   : > { %v1691_v55 = vpop.permute.xlu1 %1690 }
 0x451   : > { %v1739_v27 = vadd.f32 %v2075_v56, %v1691_v55  ;;  %1698 = vrot.lane.b32.xlu2 %v1652_v4, %s2128_s23 }
 0x453   : > { %1771 = vrot.lane.b32.xlu1 %v1739_v27, %s2123_s20 }
 0x456   : > { %v1654_v38 = vpop.f32.mrf.mxu0 }
 0x457   : > { %v1655_v29 = vadd.f32 %v1654_v38, %v1598_v21 }
 0x458   : > { %v1697_v51 = vpop.permute.xlu1 %1696 }
 0x459   : > { %1704 = vrot.lane.b32.xlu2 %v1655_v29, %s2128_s23  ;;  %v1743_v16 = vadd.f32 %v2077_v28, %v1697_v51 }
 0x45e   : > { %v1656_v49 = vpop.f32.mrf.mxu0  ;;  %v1668_v41 = vpop.f32.mrf.mxu1 }
 0x45f   : > { %v1657_v22 = vadd.f32 %v1656_v49, %v1603_v42  ;;  %v1669_v57 = vadd.f32 %v1668_v41, %v1588_v20 }
 0x460   : > { %v1703_v52 = vpop.permute.xlu1 %1702 }
 0x461   : > { %1694 = vrot.lane.b32.xlu0 %v1669_v57, %s2128_s23  ;;  %1710 = vrot.lane.b32.xlu2 %v1657_v22, %s2128_s23  ;;  %v1747_v2 = vadd.f32 %v2079_v53, %v1703_v52 }
 0x466   : > { %v1670_v61 = vpop.f32.mrf.mxu1 }
 0x467   : > { %v1671_v48 = vadd.f32 %v1670_v61, %v1593_v35 }
 0x468   : > { %v1709_v15 = vpop.permute.xlu1 %1708 }
 0x469   : > { %1700 = vrot.lane.b32.xlu0 %v1671_v48, %s2128_s23  ;;  %v1751_v9 = vadd.f32 %v2081_v3, %v1709_v15 }
 0x46e   : > { %v1673_v18 = vpop.f32.mrf.mxu1 }
 0x46f   : > { %v1674_v19 = vadd.f32 %v1673_v18, %v1598_v21 }
 0x471   : > { %1706 = vrot.lane.b32.xlu0 %v1674_v19, %s2128_s23 }
 0x476   : > { %v1675_v44 = vpop.f32.mrf.mxu1 }
 0x477   : > { %v1676_v47 = vadd.f32 %v1675_v44, %v1603_v42 }
 0x479   : > { %1712 = vrot.lane.b32.xlu0 %v1676_v47, %s2128_s23 }
 0x4a3   : > { %v1693_v11 = vpop.permute.xlu2 %1692 }
 0x4a4   : > { %v1715_v25 = vsel %vm1714_vm9, %v1691_v55, %v1693_v11 }
 0x4a5   : > { %v1740_v36 = vadd.f32 %v2076_v39, %v1715_v25 }
 0x4a7   : > { %1773 = vrot.lane.b32.xlu2 %v1740_v36, %s2123_s20 }
 0x4ab   : > { %v1699_v59 = vpop.permute.xlu2 %1698 }
 0x4ac   : > { %v1717_v0 = vsel %vm1714_vm9, %v1697_v51, %v1699_v59 }
 0x4ad   : > { %v1744_v8 = vadd.f32 %v2078_v63, %v1717_v0 }
 0x4af   : > { %1779 = vrot.lane.b32.xlu2 %v1743_v16, %s2123_s20  ;;  %1781 = vrot.lane.b32.xlu0 %v1744_v8, %s2123_s20 }
 0x4b3   : > { %v1705_v62 = vpop.permute.xlu2 %1704 }
 0x4b4   : > { %v1719_v7 = vsel %vm1714_vm9, %v1703_v52, %v1705_v62 }
 0x4b5   : > { %v1748_v1 = vadd.f32 %v2080_v58, %v1719_v7 }
 0x4b7   : > { %1787 = vrot.lane.b32.xlu0 %v1747_v2, %s2123_s20  ;;  %1789 = vrot.lane.b32.xlu1 %v1748_v1, %s2123_s20 }
 0x4bb   : > { %v1711_v5 = vpop.permute.xlu2 %1710 }
 0x4bc   : > { %v1721_v46 = vsel %vm1714_vm9, %v1709_v15, %v1711_v5 }
 0x4bd   : > { %v1752_v37 = vadd.f32 %v2085_v43, %v1721_v46 }
 0x4bf   : > { %1795 = vrot.lane.b32.xlu1 %v1751_v9, %s2123_s20 }
 0x4c5   : > { %v1772_v45 = vpop.permute.xlu1 %1771 }
 0x4d3   : > { %v1695_v23 = vpop.permute.xlu0 %1694 }
 0x4d4   : > { %v1716_v50 = vsel %vm1714_vm9, %v1693_v11, %v1695_v23  ;;  %v1742_v14 = vadd.f32 %v2927_v60, %v1695_v23 }
 0x4d5   : > { %v1741_v32 = vadd.f32 %v2948_v33, %v1716_v50 }
 0x4d6   : > { %1777 = vrot.lane.b32.xlu1 %v1742_v14, %s2123_s20 }
 0x4d7   : > { %1775 = vrot.lane.b32.xlu0 %v1741_v32, %s2123_s20 }
 0x4db   : > { %v1701_v30 = vpop.permute.xlu0 %1700 }
 0x4dc   : > { %v1718_v54 = vsel %vm1714_vm9, %v1699_v59, %v1701_v30  ;;  %v1746_v34 = vadd.f32 %v3447_v31, %v1701_v30 }
 0x4dd   : > { %v1745_v20 = vadd.f32 %v3448_v24, %v1718_v54 }
 0x4de   : > { %1785 = vrot.lane.b32.xlu2 %v1746_v34, %s2123_s20 }
 0x4df   : > { %1783 = vrot.lane.b32.xlu1 %v1745_v20, %s2123_s20 }
 0x4e3   : > { %v1707_v60 = vpop.permute.xlu0 %1706 }
 0x4e4   : > { %v1720_v33 = vsel %vm1714_vm9, %v1705_v62, %v1707_v60  ;;  %v1750_v26 = vadd.f32 %v2082_v12, %v1707_v60 }
 0x4e5   : > { %v1749_v35 = vadd.f32 %v2083_v13, %v1720_v33 }
 0x4e6   : > { %1793 = vrot.lane.b32.xlu0 %v1750_v26, %s2123_s20 }
 0x4e7   : > { %1791 = vrot.lane.b32.xlu2 %v1749_v35, %s2123_s20 }
 0x4eb   : > { %v1713_v21 = vpop.permute.xlu0 %1712 }
 0x4ec   : > { %v1722_v6 = vsel %vm1714_vm9, %v1711_v5, %v1713_v21  ;;  %v1754_v42 = vadd.f32 %v2084_v10, %v1713_v21 }
 0x4ed   : > { %v1753_v17 = vadd.f32 %v2086_v40, %v1722_v6 }
 0x4ee   : > { %1801 = vrot.lane.b32.xlu1 %v1754_v42, %s2123_s20 }
 0x4ef   : > { %1799 = vrot.lane.b32.xlu0 %v1753_v17, %s2123_s20  ;;  %1797 = vrot.lane.b32.xlu2 %v1752_v37, %s2123_s20 }
 0x501   : > { %v1774_v4 = vpop.permute.xlu2 %1773 }
 0x502   : > { %v1803_v55 = vsel %vm814_vm3, %v1772_v45, %v1774_v4 }
 0x503   : > { %1827 = vst [vmem:[%s3336_s8] sm:$0xff] %v1803_v55 }
 0x509   : > { %v1780_v56 = vpop.permute.xlu2 %1779 }
 0x521   : > { %v1782_v27 = vpop.permute.xlu0 %1781 }
 0x522   : > { %v1806_v38 = vsel %vm814_vm3, %v1780_v56, %v1782_v27 }
 0x523   : > { %1830 = vst [vmem:[%s3336_s8 + $0x18] sm:$0xff] %v1806_v38 }
 0x529   : > { %v1788_v29 = vpop.permute.xlu0 %1787  ;;  %v1790_v49 = vpop.permute.xlu1 %1789 }
 0x52a   : > { %v1809_v41 = vsel %vm814_vm3, %v1788_v29, %v1790_v49 }
 0x52b   : > { %1833 = vst [vmem:[%s3336_s8 + $0x30] sm:$0xff] %v1809_v41 }
 0x531   : > { %v1796_v57 = vpop.permute.xlu1 %1795 }
 0x538   : > { %v1786_v22 = vpop.permute.xlu2 %1785 }
 0x541   : > { %v1792_v61 = vpop.permute.xlu2 %1791 }
 0x542   : > { %v1810_v48 = vsel %vm814_vm3, %v1790_v49, %v1792_v61 }
 0x543   : > { %1834 = vst [vmem:[%s3336_s8 + $0x38] sm:$0xff] %v1810_v48 }
 0x548   : > { %v1778_v18 = vpop.permute.xlu1 %1777 }
 0x549   : > { %v1776_v19 = vpop.permute.xlu0 %1775  ;;  %v1798_v44 = vpop.permute.xlu2 %1797 }
 0x54a   : > { %v1804_v47 = vsel %vm814_vm3, %v1774_v4, %v1776_v19  ;;  %v1805_v11 = vsel %vm814_vm3, %v1776_v19, %v1778_v18  ;;  %v1812_v25 = vsel %vm814_vm3, %v1796_v57, %v1798_v44 }
 0x54b   : > { %1828 = vst [vmem:[%s3336_s8 + $0x8] sm:$0xff] %v1804_v47 }
 0x54c   : > { %1829 = vst [vmem:[%s3336_s8 + $0x10] sm:$0xff] %v1805_v11 }
 0x54d   : > { %1836 = vst [vmem:[%s3336_s8 + $0x48] sm:$0xff] %v1812_v25 }
 0x551   : > { %v1784_v39 = vpop.permute.xlu1 %1783 }
 0x552   : > { %v1807_v36 = vsel %vm814_vm3, %v1782_v27, %v1784_v39  ;;  %v1808_v51 = vsel %vm814_vm3, %v1784_v39, %v1786_v22 }
 0x553   : > { %1831 = vst [vmem:[%s3336_s8 + $0x20] sm:$0xff] %v1807_v36 }
 0x554   : > { %1832 = vst [vmem:[%s3336_s8 + $0x28] sm:$0xff] %v1808_v51 }
 0x558   : > { %v1794_v59 = vpop.permute.xlu0 %1793 }
 0x559   : > { %v1811_v0 = vsel %vm814_vm3, %v1792_v61, %v1794_v59 }
 0x55a   : > { %1835 = vst [vmem:[%s3336_s8 + $0x40] sm:$0xff] %v1811_v0 }
 0x560   : > { %v1802_v28 = vpop.permute.xlu1 %1801 }
 0x561   : > { %v1800_v16 = vpop.permute.xlu0 %1799 }
 0x562   : > { %v1813_v63 = vsel %vm814_vm3, %v1798_v44, %v1800_v16  ;;  %v1814_v8 = vsel %vm814_vm3, %v1800_v16, %v1802_v28 }
 0x563   : > { %1837 = vst [vmem:[%s3336_s8 + $0x50] sm:$0xff] %v1813_v63 }
 0x564   : > { %1838 = vst [vmem:[%s3336_s8 + $0x58] sm:$0xff] %v1814_v8 }
 0x565 PF: > { %s17_s26 = sadd.s32 1, %s2109_s26   ;;  %s3449_s24 = smov %s2105_s25 }
 0x566   : > { %p14_p5 = scmp.ge.s32.totalorder %s17_s26, 4   ;;  %s3450_s25 = smov %s3452_s27 }
 0x568   :  { %16 = sbr.rel (!%p14_p5) target bundleno = 2 (0x2), region = 78 }

</bundles_post_ra>
